<compile_context>
chip_gen: v7x
topology: tpu7x:2x2x1
jax: 0.10.0
libtpu: 0.0.40
codegen_flags: <defaults>
</compile_context>

<pallas_src>
import functools

import jax
import jax.numpy as jnp
from jax import lax
from jax.experimental import pallas as pl
from jax.experimental.pallas import tpu as pltpu


# ----------------------------------------------------------------------------
# Whole-array VMEM block spec (no grid; every operand is a single small tile).
# ----------------------------------------------------------------------------
def _vmem_spec():
    return pl.BlockSpec(memory_space=pltpu.MemorySpace.VMEM)


# ----------------------------------------------------------------------------
# The single fused kernel.  Specialized to the configured layer counts:
#   video_bi_gcn: 2 layers, video_weight_gcn: 1 layer, hetero: 1 layer.
# ----------------------------------------------------------------------------
def _fused_forward_kernel(
        # ---- inputs -------------------------------------------------------
        adj_ref,        # (N, N)   bidirectional chain adjacency (normalized)
        x_ref,          # (N, Df)  frame features
        tok_ref,        # (S, Dt)  text token features
        segmat_ref,     # (Ns, N)  mean-pooling matrix (rows sum to 1)
        w0_ref, w1_ref,             # bi-GCN weights
        w2_ref,                     # weight-GCN weight
        gwih_ref, gwhh_ref,         # GRU weights, pre-transposed: (Dt,3H),(H,3H)
        gbih_ref, gbhh_ref,         # GRU biases (1,3H)
        wtcat_ref,                  # (H, 2H) = concat([Wtt, Wtf], axis=1)
        wft_ref, wff_ref,           # (H, H) hetero frame-side weights
        bt_ref, bf_ref,             # (1, H) hetero biases
        fcw_ref, fcb_ref,           # (H, 1), (1, 1) final Linear
        # ---- outputs ------------------------------------------------------
        bi_ref,         # (N, H)   bi_frame_features
        wadj_ref,       # (N, N)   weight_adj
        wfeat_ref,      # (N, H)   weight_frame_features
        text_ref,       # (1, H)   text_feature (GRU final hidden)
        thet_ref,       # (1, H)   text_feature_hetero
        fhet_ref,       # (N, H)   frame_features_hetero
        segfeat_ref,    # (Ns, H)  segment_features
        score_ref,      # (Ns, 1)  segment_scores (column)
        *, hidden):
    f32 = jnp.float32
    H = hidden

    adj = adj_ref[...]
    x = x_ref[...]
    n = x.shape[0]

    # ---- video_bi_gcn: act(A @ X @ W) per layer ---------------------------
    # TODO(synk): MultiLayerGcn internals unavailable; assuming ReLU between
    # layers (none after the last), dropout disabled (eval mode).
    h = jnp.dot(x, w0_ref[...], preferred_element_type=f32)
    h = jnp.maximum(jnp.dot(adj, h, preferred_element_type=f32), 0.0)
    h = jnp.dot(h, w1_ref[...], preferred_element_type=f32)
    bi = jnp.dot(adj, h, preferred_element_type=f32)
    bi_ref[...] = bi

    # ---- weight adjacency: exp(-dist / mean(dist)) -------------------------
    # TODO(synk): generate_weight_adj internals unavailable; mean is taken over
    # the full NxN distance matrix (diagonal included, pairs counted twice).
    sq_col = jnp.sum(bi * bi, axis=-1, keepdims=True)          # (N, 1)
    sq_row = jnp.sum(bi * bi, axis=-1)[None, :]                # (1, N), no transpose
    gram = jnp.dot(bi, bi.T, preferred_element_type=f32)       # (N, N)
    d2 = jnp.maximum(sq_col + sq_row - 2.0 * gram, 0.0)
    dist = jnp.sqrt(d2)
    inv_mean = pl.reciprocal(jnp.mean(dist, keepdims=True), approx=True)  # EUP
    wadj = jnp.exp(-dist * inv_mean)
    wadj_ref[...] = wadj

    # ---- video_weight_gcn (single layer, no trailing activation) ----------
    wfeat = jnp.dot(wadj, jnp.dot(bi, w2_ref[...], preferred_element_type=f32),
                    preferred_element_type=f32)
    wfeat_ref[...] = wfeat

    # ---- GRU over text tokens (nn.GRU, single layer, batch=1) -------------
    wih_t = gwih_ref[...]
    whh_t = gwhh_ref[...]
    bih = gbih_ref[...]
    bhh = gbhh_ref[...]
    seq_len = tok_ref.shape[0]

    def gru_step(s, h_cur):
        x_row = tok_ref[pl.ds(s, 1), :]                                   # (1, Dt)
        gi = jnp.dot(x_row, wih_t, preferred_element_type=f32) + bih      # (1, 3H)
        gh = jnp.dot(h_cur, whh_t, preferred_element_type=f32) + bhh      # (1, 3H)
        r = jax.nn.sigmoid(gi[:, :H] + gh[:, :H])
        z = jax.nn.sigmoid(gi[:, H:2 * H] + gh[:, H:2 * H])
        nn_ = jnp.tanh(gi[:, 2 * H:] + r * gh[:, 2 * H:])
        return (1.0 - z) * nn_ + z * h_cur

    t = lax.fori_loop(0, seq_len, gru_step, jnp.zeros((1, H), f32), unroll=True)
    text_ref[...] = t

    # ---- hetero text<->frame layer (ReLU) ----------------------------------
    # TODO(synk): MultiLayerHeteroGnn / hetero_edge_dims internals unavailable;
    # implemented as bipartite message passing: text gets the mean frame
    # message, frames get the broadcast text message.
    f = wfeat
    ones_row = jnp.full((1, n), 1.0 / n, f32)
    f_mean = jnp.dot(ones_row, f, preferred_element_type=f32)             # (1, H)
    t_cat = jnp.dot(t, wtcat_ref[...], preferred_element_type=f32)        # (1, 2H): [t@Wtt | t@Wtf]
    frame_msg = jnp.dot(f_mean, wft_ref[...], preferred_element_type=f32) # (1, H)
    f_ff = jnp.dot(f, wff_ref[...], preferred_element_type=f32)           # (N, H)
    t_new = jnp.maximum(t_cat[:, :H] + frame_msg + bt_ref[...], 0.0)
    f_new = jnp.maximum(f_ff + t_cat[:, H:] + bf_ref[...], 0.0)
    thet_ref[...] = t_new
    fhet_ref[...] = f_new

    # ---- segment mean-pooling + Linear(H, 1) --------------------------------
    seg = jnp.dot(segmat_ref[...], f_new, preferred_element_type=f32)     # (Ns, H)
    segfeat_ref[...] = seg
    score_ref[...] = (jnp.dot(seg, fcw_ref[...], preferred_element_type=f32)
                      + fcb_ref[...])


# ----------------------------------------------------------------------------
# Plain-JAX glue (all jitted together with the single pallas_call)
# ----------------------------------------------------------------------------
def bidirectional_graph(n):
    # chain graph with forward/backward edges + self loops, symmetric-normalized
    idx = jnp.arange(n)
    a = (jnp.abs(idx[:, None] - idx[None, :]) == 1).astype(jnp.float32)
    a = a + jnp.eye(n, dtype=jnp.float32)
    dinv = 1.0 / jnp.sqrt(jnp.sum(a, axis=1))
    return a * dinv[:, None] * dinv[None, :]


@jax.jit
def multi_modal_gnn_forward(params, frame_features, text_token_features,
                            segment_matrix):
    assert len(params["video_bi_gcn"]) == 2
    assert len(params["video_weight_gcn"]) == 1
    assert len(params["hetero"]) == 1

    n = frame_features.shape[0]
    hidden = params["video_bi_gcn"][-1].shape[1]
    n_seg = segment_matrix.shape[0]

    adj_bi = bidirectional_graph(n)                      # compile-time constant

    gru = params["gru"]
    gru_wih_t = gru["W_ih"].T                            # (Dt, 3H)
    gru_whh_t = gru["W_hh"].T                            # (H, 3H)
    gru_bih = gru["b_ih"][None, :]                       # (1, 3H)
    gru_bhh = gru["b_hh"][None, :]

    het = params["hetero"][0]
    wt_cat = jnp.concatenate([het["Wtt"], het["Wtf"]], axis=1)   # (H, 2H)

    inputs = (adj_bi, frame_features, text_token_features, segment_matrix,
              params["video_bi_gcn"][0], params["video_bi_gcn"][1],
              params["video_weight_gcn"][0],
              gru_wih_t, gru_whh_t, gru_bih, gru_bhh,
              wt_cat, het["Wft"], het["Wff"], het["bt"], het["bf"],
              params["fc_w"], params["fc_b"])

    out_shapes = (
        jax.ShapeDtypeStruct((n, hidden), jnp.float32),       # bi_frame_features
        jax.ShapeDtypeStruct((n, n), jnp.float32),            # weight_adj
        jax.ShapeDtypeStruct((n, hidden), jnp.float32),       # weight_frame_features
        jax.ShapeDtypeStruct((1, hidden), jnp.float32),       # text_feature
        jax.ShapeDtypeStruct((1, hidden), jnp.float32),       # text_feature_hetero
        jax.ShapeDtypeStruct((n, hidden), jnp.float32),       # frame_features_hetero
        jax.ShapeDtypeStruct((n_seg, hidden), jnp.float32),   # segment_features
        jax.ShapeDtypeStruct((n_seg, 1), jnp.float32),        # segment_scores column
    )

    kernel = functools.partial(_fused_forward_kernel, hidden=hidden)
    outs = pl.pallas_call(
        kernel,
        in_specs=[_vmem_spec() for _ in inputs],
        out_specs=tuple(_vmem_spec() for _ in out_shapes),
        out_shape=out_shapes,
    )(*inputs)

    (bi, wadj, wfeat, text_row, t_het, f_het, segfeat, scores) = outs
    return (scores[:, 0], bi, wfeat, wadj, text_row[0], t_het[0], f_het, segfeat)


# ----------------------------------------------------------------------------
# Deterministic parameter initialization
# ----------------------------------------------------------------------------
def init_params(key, frame_dim, text_dim, hidden):
    ks = list(jax.random.split(key, 20))

    def dense(k, shape):
        return (1.0 / jnp.sqrt(shape[0])) * jax.random.normal(k, shape, jnp.float32)

    params = {}
    # video_bi_dims = [frame_dim, hidden, hidden]  -> 2 GCN layers
    params["video_bi_gcn"] = [dense(ks[0], (frame_dim, hidden)),
                              dense(ks[1], (hidden, hidden))]
    # video_weight_dims = [hidden, hidden] -> 1 GCN layer
    params["video_weight_gcn"] = [dense(ks[2], (hidden, hidden))]
    # GRU(text_dim -> hidden)
    params["gru"] = {
        "W_ih": dense(ks[3], (3 * hidden, text_dim)),
        "W_hh": dense(ks[4], (3 * hidden, hidden)),
        "b_ih": 0.01 * jax.random.normal(ks[5], (3 * hidden,), jnp.float32),
        "b_hh": 0.01 * jax.random.normal(ks[6], (3 * hidden,), jnp.float32),
    }
    # hetero_node_dims = [(hidden, hidden)] -> 1 hetero layer
    params["hetero"] = [{
        "Wtt": dense(ks[7], (hidden, hidden)),
        "Wft": dense(ks[8], (hidden, hidden)),
        "Wff": dense(ks[9], (hidden, hidden)),
        "Wtf": dense(ks[10], (hidden, hidden)),
        "bt": 0.01 * jax.random.normal(ks[11], (1, hidden), jnp.float32),
        "bf": 0.01 * jax.random.normal(ks[12], (1, hidden), jnp.float32),
    }]
    # fc: Linear(hidden, 1)
    params["fc_w"] = dense(ks[13], (hidden, 1))
    params["fc_b"] = 0.01 * jax.random.normal(ks[14], (1, 1), jnp.float32)
    return params


# ----------------------------------------------------------------------------
if __name__ == "__main__":
    key = jax.random.PRNGKey(0)
    k_frames, k_text, k_params = jax.random.split(key, 3)

    NUM_FRAMES, FRAME_DIM = 16, 32     # frame_features: ('num_frames', 'd')
    SEQ_LEN, TEXT_DIM = 8, 16          # synthetic TextProcessor output
    HIDDEN = 32
    NUM_SEGMENTS = 4

    frame_features = jax.random.normal(k_frames, (NUM_FRAMES, FRAME_DIM), jnp.float32)
    # TODO(synk): TextProcessor is a pretrained language model; replaced with
    # deterministic synthetic token features of the same (seq, dim) shape.
    text_token_features = jax.random.normal(k_text, (SEQ_LEN, TEXT_DIM), jnp.float32)

    # segment_indices = [[0..3], [4..7], [8..11], [12..15]]  (mean pooling)
    seg_len = NUM_FRAMES // NUM_SEGMENTS
    seg_ids = jnp.repeat(jnp.arange(NUM_SEGMENTS), seg_len)
    segment_matrix = (jax.nn.one_hot(seg_ids, NUM_SEGMENTS, dtype=jnp.float32).T
                      / float(seg_len))                               # (4, 16)

    params = init_params(k_params, FRAME_DIM, TEXT_DIM, HIDDEN)

    outputs = multi_modal_gnn_forward(params, frame_features,
                                      text_token_features, segment_matrix)
    segment_scores = outputs[0]
    jax.block_until_ready(segment_scores)
    assert segment_scores.shape == (NUM_SEGMENTS,)
    print("KERNEL_OK")
</pallas_src>

<mosaic_0001>
module attributes {stable_mosaic.version = 11 : i64} {
  func.func @_fused_forward_kernel(%arg0: memref<16x16xf32, #tpu.memory_space<vmem>>, %arg1: memref<16x32xf32, #tpu.memory_space<vmem>>, %arg2: memref<8x16xf32, #tpu.memory_space<vmem>>, %arg3: memref<4x16xf32, #tpu.memory_space<vmem>>, %arg4: memref<32x32xf32, #tpu.memory_space<vmem>>, %arg5: memref<32x32xf32, #tpu.memory_space<vmem>>, %arg6: memref<32x32xf32, #tpu.memory_space<vmem>>, %arg7: memref<16x96xf32, #tpu.memory_space<vmem>>, %arg8: memref<32x96xf32, #tpu.memory_space<vmem>>, %arg9: memref<1x96xf32, #tpu.memory_space<vmem>>, %arg10: memref<1x96xf32, #tpu.memory_space<vmem>>, %arg11: memref<32x64xf32, #tpu.memory_space<vmem>>, %arg12: memref<32x32xf32, #tpu.memory_space<vmem>>, %arg13: memref<32x32xf32, #tpu.memory_space<vmem>>, %arg14: memref<1x32xf32, #tpu.memory_space<vmem>>, %arg15: memref<1x32xf32, #tpu.memory_space<vmem>>, %arg16: memref<32x1xf32, #tpu.memory_space<vmem>>, %arg17: memref<1x1xf32, #tpu.memory_space<vmem>>, %arg18: memref<16x32xf32, #tpu.memory_space<vmem>>, %arg19: memref<16x16xf32, #tpu.memory_space<vmem>>, %arg20: memref<16x32xf32, #tpu.memory_space<vmem>>, %arg21: memref<1x32xf32, #tpu.memory_space<vmem>>, %arg22: memref<1x32xf32, #tpu.memory_space<vmem>>, %arg23: memref<16x32xf32, #tpu.memory_space<vmem>>, %arg24: memref<4x32xf32, #tpu.memory_space<vmem>>, %arg25: memref<4x1xf32, #tpu.memory_space<vmem>>) attributes {dimension_semantics = [], scalar_prefetch = 0 : i64, scratch_operands = 0 : i64, tpu.core_type = #tpu.core_type<tc>} {
    %c0 = arith.constant 0 : index
    %c0_0 = arith.constant 0 : index
    %0 = vector.load %arg0[%c0, %c0_0] : memref<16x16xf32, #tpu.memory_space<vmem>>, vector<16x16xf32>
    %c0_1 = arith.constant 0 : index
    %c0_2 = arith.constant 0 : index
    %1 = vector.load %arg1[%c0_1, %c0_2] : memref<16x32xf32, #tpu.memory_space<vmem>>, vector<16x32xf32>
    %c0_3 = arith.constant 0 : index
    %c0_4 = arith.constant 0 : index
    %2 = vector.load %arg4[%c0_3, %c0_4] : memref<32x32xf32, #tpu.memory_space<vmem>>, vector<32x32xf32>
    %cst = arith.constant dense<0.000000e+00> : vector<16x32xf32>
    %3 = tpu.matmul %1, %2, %cst {dimension_numbers = #tpu.dot_dimension_numbers<[1], [0], [0], [1], [0, 0, 1, 1], [], []>} : vector<16x32xf32>, vector<32x32xf32>, vector<16x32xf32> -> vector<16x32xf32>
    %cst_5 = arith.constant dense<0.000000e+00> : vector<16x32xf32>
    %4 = tpu.matmul %0, %3, %cst_5 {dimension_numbers = #tpu.dot_dimension_numbers<[1], [0], [0], [1], [0, 0, 1, 1], [], []>} : vector<16x16xf32>, vector<16x32xf32>, vector<16x32xf32> -> vector<16x32xf32>
    %cst_6 = arith.constant 0.000000e+00 : f32
    %5 = vector.broadcast %cst_6 : f32 to vector<16x32xf32>
    %6 = arith.maximumf %4, %5 : vector<16x32xf32>
    %c0_7 = arith.constant 0 : index
    %c0_8 = arith.constant 0 : index
    %7 = vector.load %arg5[%c0_7, %c0_8] : memref<32x32xf32, #tpu.memory_space<vmem>>, vector<32x32xf32>
    %cst_9 = arith.constant dense<0.000000e+00> : vector<16x32xf32>
    %8 = tpu.matmul %6, %7, %cst_9 {dimension_numbers = #tpu.dot_dimension_numbers<[1], [0], [0], [1], [0, 0, 1, 1], [], []>} : vector<16x32xf32>, vector<32x32xf32>, vector<16x32xf32> -> vector<16x32xf32>
    %cst_10 = arith.constant dense<0.000000e+00> : vector<16x32xf32>
    %9 = tpu.matmul %0, %8, %cst_10 {dimension_numbers = #tpu.dot_dimension_numbers<[1], [0], [0], [1], [0, 0, 1, 1], [], []>} : vector<16x16xf32>, vector<16x32xf32>, vector<16x32xf32> -> vector<16x32xf32>
    %c0_11 = arith.constant 0 : index
    %c0_12 = arith.constant 0 : index
    %10 = vector.load %arg18[%c0_11, %c0_12] : memref<16x32xf32, #tpu.memory_space<vmem>>, vector<16x32xf32>
    tpu.vector_store %arg18[%c0_11, %c0_12], %9 {strides = array<i32>} : memref<16x32xf32, #tpu.memory_space<vmem>>, vector<16x32xf32>,
    %11 = arith.mulf %9, %9 : vector<16x32xf32>
    %cst_13 = arith.constant dense<0.000000e+00> : vector<16xf32>
    %12 = vector.multi_reduction <add>, %11, %cst_13 [1] : vector<16x32xf32> to vector<16xf32>
    %13 = vector.shape_cast %12 : vector<16xf32> to vector<16x1xf32>
    %14 = arith.mulf %9, %9 : vector<16x32xf32>
    %cst_14 = arith.constant dense<0.000000e+00> : vector<16xf32>
    %15 = vector.multi_reduction <add>, %14, %cst_14 [1] : vector<16x32xf32> to vector<16xf32>
    %16 = vector.shape_cast %15 : vector<16xf32> to vector<1x16xf32>
    %17 = tpu.transpose %9, [1, 0] : vector<16x32xf32> -> vector<32x16xf32>
    %cst_15 = arith.constant dense<0.000000e+00> : vector<16x16xf32>
    %18 = tpu.matmul %9, %17, %cst_15 {dimension_numbers = #tpu.dot_dimension_numbers<[1], [0], [0], [1], [0, 0, 1, 1], [], []>} : vector<16x32xf32>, vector<32x16xf32>, vector<16x16xf32> -> vector<16x16xf32>
    %19 = vector.broadcast %13 : vector<16x1xf32> to vector<16x16xf32>
    %20 = vector.broadcast %16 : vector<1x16xf32> to vector<16x16xf32>
    %21 = arith.addf %19, %20 : vector<16x16xf32>
    %cst_16 = arith.constant 2.000000e+00 : f32
    %22 = vector.broadcast %cst_16 : f32 to vector<16x16xf32>
    %23 = arith.mulf %22, %18 : vector<16x16xf32>
    %24 = arith.subf %21, %23 : vector<16x16xf32>
    %cst_17 = arith.constant 0.000000e+00 : f32
    %25 = vector.broadcast %cst_17 : f32 to vector<16x16xf32>
    %26 = arith.maximumf %24, %25 : vector<16x16xf32>
    %27 = math.sqrt %26 : vector<16x16xf32>
    %28 = vector.shape_cast %27 : vector<16x16xf32> to vector<1x16x16xf32>
    %cst_18 = arith.constant dense<0.000000e+00> : vector<1xf32>
    %29 = vector.multi_reduction <add>, %28, %cst_18 [1, 2] : vector<1x16x16xf32> to vector<1xf32>
    %30 = vector.shape_cast %29 : vector<1xf32> to vector<1x1x1xf32>
    %31 = vector.extract %30[0, 0, 0] : f32 from vector<1x1x1xf32>
    %32 = vector.broadcast %31 : f32 to vector<1x1xf32>
    %cst_19 = arith.constant 2.560000e+02 : f32
    %33 = vector.broadcast %cst_19 : f32 to vector<1x1xf32>
    %34 = arith.divf %32, %33 : vector<1x1xf32>
    %35 = tpu.reciprocal %34 {approx = true} : vector<1x1xf32> -> vector<1x1xf32>
    %cst_20 = arith.constant 0.000000e+00 : f32
    %36 = vector.broadcast %cst_20 : f32 to vector<16x16xf32>
    %37 = arith.subf %36, %27 : vector<16x16xf32>
    %38 = vector.broadcast %35 : vector<1x1xf32> to vector<16x16xf32>
    %39 = arith.mulf %37, %38 : vector<16x16xf32>
    %40 = math.exp %39 : vector<16x16xf32>
    %c0_21 = arith.constant 0 : index
    %c0_22 = arith.constant 0 : index
    %41 = vector.load %arg19[%c0_21, %c0_22] : memref<16x16xf32, #tpu.memory_space<vmem>>, vector<16x16xf32>
    tpu.vector_store %arg19[%c0_21, %c0_22], %40 {strides = array<i32>} : memref<16x16xf32, #tpu.memory_space<vmem>>, vector<16x16xf32>,
    %c0_23 = arith.constant 0 : index
    %c0_24 = arith.constant 0 : index
    %42 = vector.load %arg6[%c0_23, %c0_24] : memref<32x32xf32, #tpu.memory_space<vmem>>, vector<32x32xf32>
    %cst_25 = arith.constant dense<0.000000e+00> : vector<16x32xf32>
    %43 = tpu.matmul %9, %42, %cst_25 {dimension_numbers = #tpu.dot_dimension_numbers<[1], [0], [0], [1], [0, 0, 1, 1], [], []>} : vector<16x32xf32>, vector<32x32xf32>, vector<16x32xf32> -> vector<16x32xf32>
    %cst_26 = arith.constant dense<0.000000e+00> : vector<16x32xf32>
    %44 = tpu.matmul %40, %43, %cst_26 {dimension_numbers = #tpu.dot_dimension_numbers<[1], [0], [0], [1], [0, 0, 1, 1], [], []>} : vector<16x16xf32>, vector<16x32xf32>, vector<16x32xf32> -> vector<16x32xf32>
    %c0_27 = arith.constant 0 : index
    %c0_28 = arith.constant 0 : index
    %45 = vector.load %arg20[%c0_27, %c0_28] : memref<16x32xf32, #tpu.memory_space<vmem>>, vector<16x32xf32>
    tpu.vector_store %arg20[%c0_27, %c0_28], %44 {strides = array<i32>} : memref<16x32xf32, #tpu.memory_space<vmem>>, vector<16x32xf32>,
    %c0_29 = arith.constant 0 : index
    %c0_30 = arith.constant 0 : index
    %46 = vector.load %arg7[%c0_29, %c0_30] : memref<16x96xf32, #tpu.memory_space<vmem>>, vector<16x96xf32>
    %c0_31 = arith.constant 0 : index
    %c0_32 = arith.constant 0 : index
    %47 = vector.load %arg8[%c0_31, %c0_32] : memref<32x96xf32, #tpu.memory_space<vmem>>, vector<32x96xf32>
    %c0_33 = arith.constant 0 : index
    %c0_34 = arith.constant 0 : index
    %48 = vector.load %arg9[%c0_33, %c0_34] : memref<1x96xf32, #tpu.memory_space<vmem>>, vector<1x96xf32>
    %c0_35 = arith.constant 0 : index
    %c0_36 = arith.constant 0 : index
    %49 = vector.load %arg10[%c0_35, %c0_36] : memref<1x96xf32, #tpu.memory_space<vmem>>, vector<1x96xf32>
    %cst_37 = arith.constant 0.000000e+00 : f32
    %50 = vector.broadcast %cst_37 : f32 to vector<1x32xf32>
    %c0_i32 = arith.constant 0 : i32
    %51 = arith.index_cast %c0_i32 : i32 to index
    %c0_38 = arith.constant 0 : index
    %52 = vector.load %arg2[%51, %c0_38] : memref<8x16xf32, #tpu.memory_space<vmem>>, vector<1x16xf32>
    %cst_39 = arith.constant dense<0.000000e+00> : vector<1x96xf32>
    %53 = tpu.matmul %52, %46, %cst_39 {dimension_numbers = #tpu.dot_dimension_numbers<[1], [0], [0], [1], [0, 0, 1, 1], [], []>} : vector<1x16xf32>, vector<16x96xf32>, vector<1x96xf32> -> vector<1x96xf32>
    %54 = arith.addf %53, %48 : vector<1x96xf32>
    %cst_40 = arith.constant dense<0.000000e+00> : vector<1x96xf32>
    %55 = tpu.matmul %50, %47, %cst_40 {dimension_numbers = #tpu.dot_dimension_numbers<[1], [0], [0], [1], [0, 0, 1, 1], [], []>} : vector<1x32xf32>, vector<32x96xf32>, vector<1x96xf32> -> vector<1x96xf32>
    %56 = arith.addf %55, %49 : vector<1x96xf32>
    %57 = vector.extract_strided_slice %54 {offsets = [0, 0], sizes = [1, 32], strides = [1, 1]} : vector<1x96xf32> to vector<1x32xf32>
    %58 = vector.extract_strided_slice %56 {offsets = [0, 0], sizes = [1, 32], strides = [1, 1]} : vector<1x96xf32> to vector<1x32xf32>
    %59 = arith.addf %57, %58 : vector<1x32xf32>
    %60 = arith.negf %59 : vector<1x32xf32>
    %61 = math.exp %60 : vector<1x32xf32>
    %cst_41 = arith.constant 1.000000e+00 : f32
    %62 = vector.broadcast %cst_41 : f32 to vector<1x32xf32>
    %63 = arith.addf %62, %61 : vector<1x32xf32>
    %64 = arith.divf %62, %63 : vector<1x32xf32>
    %65 = vector.extract_strided_slice %54 {offsets = [0, 32], sizes = [1, 32], strides = [1, 1]} : vector<1x96xf32> to vector<1x32xf32>
    %66 = vector.extract_strided_slice %56 {offsets = [0, 32], sizes = [1, 32], strides = [1, 1]} : vector<1x96xf32> to vector<1x32xf32>
    %67 = arith.addf %65, %66 : vector<1x32xf32>
    %68 = arith.negf %67 : vector<1x32xf32>
    %69 = math.exp %68 : vector<1x32xf32>
    %cst_42 = arith.constant 1.000000e+00 : f32
    %70 = vector.broadcast %cst_42 : f32 to vector<1x32xf32>
    %71 = arith.addf %70, %69 : vector<1x32xf32>
    %72 = arith.divf %70, %71 : vector<1x32xf32>
    %73 = vector.extract_strided_slice %54 {offsets = [0, 64], sizes = [1, 32], strides = [1, 1]} : vector<1x96xf32> to vector<1x32xf32>
    %74 = vector.extract_strided_slice %56 {offsets = [0, 64], sizes = [1, 32], strides = [1, 1]} : vector<1x96xf32> to vector<1x32xf32>
    %75 = arith.mulf %64, %74 : vector<1x32xf32>
    %76 = arith.addf %73, %75 : vector<1x32xf32>
    %77 = math.tanh %76 : vector<1x32xf32>
    %cst_43 = arith.constant 1.000000e+00 : f32
    %78 = vector.broadcast %cst_43 : f32 to vector<1x32xf32>
    %79 = arith.subf %78, %72 : vector<1x32xf32>
    %80 = arith.mulf %79, %77 : vector<1x32xf32>
    %81 = arith.mulf %72, %50 : vector<1x32xf32>
    %82 = arith.addf %80, %81 : vector<1x32xf32>
    %c1_i32 = arith.constant 1 : i32
    %83 = arith.index_cast %c1_i32 : i32 to index
    %c0_44 = arith.constant 0 : index
    %84 = vector.load %arg2[%83, %c0_44] : memref<8x16xf32, #tpu.memory_space<vmem>>, vector<1x16xf32>
    %cst_45 = arith.constant dense<0.000000e+00> : vector<1x96xf32>
    %85 = tpu.matmul %84, %46, %cst_45 {dimension_numbers = #tpu.dot_dimension_numbers<[1], [0], [0], [1], [0, 0, 1, 1], [], []>} : vector<1x16xf32>, vector<16x96xf32>, vector<1x96xf32> -> vector<1x96xf32>
    %86 = arith.addf %85, %48 : vector<1x96xf32>
    %cst_46 = arith.constant dense<0.000000e+00> : vector<1x96xf32>
    %87 = tpu.matmul %82, %47, %cst_46 {dimension_numbers = #tpu.dot_dimension_numbers<[1], [0], [0], [1], [0, 0, 1, 1], [], []>} : vector<1x32xf32>, vector<32x96xf32>, vector<1x96xf32> -> vector<1x96xf32>
    %88 = arith.addf %87, %49 : vector<1x96xf32>
    %89 = vector.extract_strided_slice %86 {offsets = [0, 0], sizes = [1, 32], strides = [1, 1]} : vector<1x96xf32> to vector<1x32xf32>
    %90 = vector.extract_strided_slice %88 {offsets = [0, 0], sizes = [1, 32], strides = [1, 1]} : vector<1x96xf32> to vector<1x32xf32>
    %91 = arith.addf %89, %90 : vector<1x32xf32>
    %92 = arith.negf %91 : vector<1x32xf32>
    %93 = math.exp %92 : vector<1x32xf32>
    %cst_47 = arith.constant 1.000000e+00 : f32
    %94 = vector.broadcast %cst_47 : f32 to vector<1x32xf32>
    %95 = arith.addf %94, %93 : vector<1x32xf32>
    %96 = arith.divf %94, %95 : vector<1x32xf32>
    %97 = vector.extract_strided_slice %86 {offsets = [0, 32], sizes = [1, 32], strides = [1, 1]} : vector<1x96xf32> to vector<1x32xf32>
    %98 = vector.extract_strided_slice %88 {offsets = [0, 32], sizes = [1, 32], strides = [1, 1]} : vector<1x96xf32> to vector<1x32xf32>
    %99 = arith.addf %97, %98 : vector<1x32xf32>
    %100 = arith.negf %99 : vector<1x32xf32>
    %101 = math.exp %100 : vector<1x32xf32>
    %cst_48 = arith.constant 1.000000e+00 : f32
    %102 = vector.broadcast %cst_48 : f32 to vector<1x32xf32>
    %103 = arith.addf %102, %101 : vector<1x32xf32>
    %104 = arith.divf %102, %103 : vector<1x32xf32>
    %105 = vector.extract_strided_slice %86 {offsets = [0, 64], sizes = [1, 32], strides = [1, 1]} : vector<1x96xf32> to vector<1x32xf32>
    %106 = vector.extract_strided_slice %88 {offsets = [0, 64], sizes = [1, 32], strides = [1, 1]} : vector<1x96xf32> to vector<1x32xf32>
    %107 = arith.mulf %96, %106 : vector<1x32xf32>
    %108 = arith.addf %105, %107 : vector<1x32xf32>
    %109 = math.tanh %108 : vector<1x32xf32>
    %cst_49 = arith.constant 1.000000e+00 : f32
    %110 = vector.broadcast %cst_49 : f32 to vector<1x32xf32>
    %111 = arith.subf %110, %104 : vector<1x32xf32>
    %112 = arith.mulf %111, %109 : vector<1x32xf32>
    %113 = arith.mulf %104, %82 : vector<1x32xf32>
    %114 = arith.addf %112, %113 : vector<1x32xf32>
    %c2_i32 = arith.constant 2 : i32
    %115 = arith.index_cast %c2_i32 : i32 to index
    %c0_50 = arith.constant 0 : index
    %116 = vector.load %arg2[%115, %c0_50] : memref<8x16xf32, #tpu.memory_space<vmem>>, vector<1x16xf32>
    %cst_51 = arith.constant dense<0.000000e+00> : vector<1x96xf32>
    %117 = tpu.matmul %116, %46, %cst_51 {dimension_numbers = #tpu.dot_dimension_numbers<[1], [0], [0], [1], [0, 0, 1, 1], [], []>} : vector<1x16xf32>, vector<16x96xf32>, vector<1x96xf32> -> vector<1x96xf32>
    %118 = arith.addf %117, %48 : vector<1x96xf32>
    %cst_52 = arith.constant dense<0.000000e+00> : vector<1x96xf32>
    %119 = tpu.matmul %114, %47, %cst_52 {dimension_numbers = #tpu.dot_dimension_numbers<[1], [0], [0], [1], [0, 0, 1, 1], [], []>} : vector<1x32xf32>, vector<32x96xf32>, vector<1x96xf32> -> vector<1x96xf32>
    %120 = arith.addf %119, %49 : vector<1x96xf32>
    %121 = vector.extract_strided_slice %118 {offsets = [0, 0], sizes = [1, 32], strides = [1, 1]} : vector<1x96xf32> to vector<1x32xf32>
    %122 = vector.extract_strided_slice %120 {offsets = [0, 0], sizes = [1, 32], strides = [1, 1]} : vector<1x96xf32> to vector<1x32xf32>
    %123 = arith.addf %121, %122 : vector<1x32xf32>
    %124 = arith.negf %123 : vector<1x32xf32>
    %125 = math.exp %124 : vector<1x32xf32>
    %cst_53 = arith.constant 1.000000e+00 : f32
    %126 = vector.broadcast %cst_53 : f32 to vector<1x32xf32>
    %127 = arith.addf %126, %125 : vector<1x32xf32>
    %128 = arith.divf %126, %127 : vector<1x32xf32>
    %129 = vector.extract_strided_slice %118 {offsets = [0, 32], sizes = [1, 32], strides = [1, 1]} : vector<1x96xf32> to vector<1x32xf32>
    %130 = vector.extract_strided_slice %120 {offsets = [0, 32], sizes = [1, 32], strides = [1, 1]} : vector<1x96xf32> to vector<1x32xf32>
    %131 = arith.addf %129, %130 : vector<1x32xf32>
    %132 = arith.negf %131 : vector<1x32xf32>
    %133 = math.exp %132 : vector<1x32xf32>
    %cst_54 = arith.constant 1.000000e+00 : f32
    %134 = vector.broadcast %cst_54 : f32 to vector<1x32xf32>
    %135 = arith.addf %134, %133 : vector<1x32xf32>
    %136 = arith.divf %134, %135 : vector<1x32xf32>
    %137 = vector.extract_strided_slice %118 {offsets = [0, 64], sizes = [1, 32], strides = [1, 1]} : vector<1x96xf32> to vector<1x32xf32>
    %138 = vector.extract_strided_slice %120 {offsets = [0, 64], sizes = [1, 32], strides = [1, 1]} : vector<1x96xf32> to vector<1x32xf32>
    %139 = arith.mulf %128, %138 : vector<1x32xf32>
    %140 = arith.addf %137, %139 : vector<1x32xf32>
    %141 = math.tanh %140 : vector<1x32xf32>
    %cst_55 = arith.constant 1.000000e+00 : f32
    %142 = vector.broadcast %cst_55 : f32 to vector<1x32xf32>
    %143 = arith.subf %142, %136 : vector<1x32xf32>
    %144 = arith.mulf %143, %141 : vector<1x32xf32>
    %145 = arith.mulf %136, %114 : vector<1x32xf32>
    %146 = arith.addf %144, %145 : vector<1x32xf32>
    %c3_i32 = arith.constant 3 : i32
    %147 = arith.index_cast %c3_i32 : i32 to index
    %c0_56 = arith.constant 0 : index
    %148 = vector.load %arg2[%147, %c0_56] : memref<8x16xf32, #tpu.memory_space<vmem>>, vector<1x16xf32>
    %cst_57 = arith.constant dense<0.000000e+00> : vector<1x96xf32>
    %149 = tpu.matmul %148, %46, %cst_57 {dimension_numbers = #tpu.dot_dimension_numbers<[1], [0], [0], [1], [0, 0, 1, 1], [], []>} : vector<1x16xf32>, vector<16x96xf32>, vector<1x96xf32> -> vector<1x96xf32>
    %150 = arith.addf %149, %48 : vector<1x96xf32>
    %cst_58 = arith.constant dense<0.000000e+00> : vector<1x96xf32>
    %151 = tpu.matmul %146, %47, %cst_58 {dimension_numbers = #tpu.dot_dimension_numbers<[1], [0], [0], [1], [0, 0, 1, 1], [], []>} : vector<1x32xf32>, vector<32x96xf32>, vector<1x96xf32> -> vector<1x96xf32>
    %152 = arith.addf %151, %49 : vector<1x96xf32>
    %153 = vector.extract_strided_slice %150 {offsets = [0, 0], sizes = [1, 32], strides = [1, 1]} : vector<1x96xf32> to vector<1x32xf32>
    %154 = vector.extract_strided_slice %152 {offsets = [0, 0], sizes = [1, 32], strides = [1, 1]} : vector<1x96xf32> to vector<1x32xf32>
    %155 = arith.addf %153, %154 : vector<1x32xf32>
    %156 = arith.negf %155 : vector<1x32xf32>
    %157 = math.exp %156 : vector<1x32xf32>
    %cst_59 = arith.constant 1.000000e+00 : f32
    %158 = vector.broadcast %cst_59 : f32 to vector<1x32xf32>
    %159 = arith.addf %158, %157 : vector<1x32xf32>
    %160 = arith.divf %158, %159 : vector<1x32xf32>
    %161 = vector.extract_strided_slice %150 {offsets = [0, 32], sizes = [1, 32], strides = [1, 1]} : vector<1x96xf32> to vector<1x32xf32>
    %162 = vector.extract_strided_slice %152 {offsets = [0, 32], sizes = [1, 32], strides = [1, 1]} : vector<1x96xf32> to vector<1x32xf32>
    %163 = arith.addf %161, %162 : vector<1x32xf32>
    %164 = arith.negf %163 : vector<1x32xf32>
    %165 = math.exp %164 : vector<1x32xf32>
    %cst_60 = arith.constant 1.000000e+00 : f32
    %166 = vector.broadcast %cst_60 : f32 to vector<1x32xf32>
    %167 = arith.addf %166, %165 : vector<1x32xf32>
    %168 = arith.divf %166, %167 : vector<1x32xf32>
    %169 = vector.extract_strided_slice %150 {offsets = [0, 64], sizes = [1, 32], strides = [1, 1]} : vector<1x96xf32> to vector<1x32xf32>
    %170 = vector.extract_strided_slice %152 {offsets = [0, 64], sizes = [1, 32], strides = [1, 1]} : vector<1x96xf32> to vector<1x32xf32>
    %171 = arith.mulf %160, %170 : vector<1x32xf32>
    %172 = arith.addf %169, %171 : vector<1x32xf32>
    %173 = math.tanh %172 : vector<1x32xf32>
    %cst_61 = arith.constant 1.000000e+00 : f32
    %174 = vector.broadcast %cst_61 : f32 to vector<1x32xf32>
    %175 = arith.subf %174, %168 : vector<1x32xf32>
    %176 = arith.mulf %175, %173 : vector<1x32xf32>
    %177 = arith.mulf %168, %146 : vector<1x32xf32>
    %178 = arith.addf %176, %177 : vector<1x32xf32>
    %c4_i32 = arith.constant 4 : i32
    %179 = arith.index_cast %c4_i32 : i32 to index
    %c0_62 = arith.constant 0 : index
    %180 = vector.load %arg2[%179, %c0_62] : memref<8x16xf32, #tpu.memory_space<vmem>>, vector<1x16xf32>
    %cst_63 = arith.constant dense<0.000000e+00> : vector<1x96xf32>
    %181 = tpu.matmul %180, %46, %cst_63 {dimension_numbers = #tpu.dot_dimension_numbers<[1], [0], [0], [1], [0, 0, 1, 1], [], []>} : vector<1x16xf32>, vector<16x96xf32>, vector<1x96xf32> -> vector<1x96xf32>
    %182 = arith.addf %181, %48 : vector<1x96xf32>
    %cst_64 = arith.constant dense<0.000000e+00> : vector<1x96xf32>
    %183 = tpu.matmul %178, %47, %cst_64 {dimension_numbers = #tpu.dot_dimension_numbers<[1], [0], [0], [1], [0, 0, 1, 1], [], []>} : vector<1x32xf32>, vector<32x96xf32>, vector<1x96xf32> -> vector<1x96xf32>
    %184 = arith.addf %183, %49 : vector<1x96xf32>
    %185 = vector.extract_strided_slice %182 {offsets = [0, 0], sizes = [1, 32], strides = [1, 1]} : vector<1x96xf32> to vector<1x32xf32>
    %186 = vector.extract_strided_slice %184 {offsets = [0, 0], sizes = [1, 32], strides = [1, 1]} : vector<1x96xf32> to vector<1x32xf32>
    %187 = arith.addf %185, %186 : vector<1x32xf32>
    %188 = arith.negf %187 : vector<1x32xf32>
    %189 = math.exp %188 : vector<1x32xf32>
    %cst_65 = arith.constant 1.000000e+00 : f32
    %190 = vector.broadcast %cst_65 : f32 to vector<1x32xf32>
    %191 = arith.addf %190, %189 : vector<1x32xf32>
    %192 = arith.divf %190, %191 : vector<1x32xf32>
    %193 = vector.extract_strided_slice %182 {offsets = [0, 32], sizes = [1, 32], strides = [1, 1]} : vector<1x96xf32> to vector<1x32xf32>
    %194 = vector.extract_strided_slice %184 {offsets = [0, 32], sizes = [1, 32], strides = [1, 1]} : vector<1x96xf32> to vector<1x32xf32>
    %195 = arith.addf %193, %194 : vector<1x32xf32>
    %196 = arith.negf %195 : vector<1x32xf32>
    %197 = math.exp %196 : vector<1x32xf32>
    %cst_66 = arith.constant 1.000000e+00 : f32
    %198 = vector.broadcast %cst_66 : f32 to vector<1x32xf32>
    %199 = arith.addf %198, %197 : vector<1x32xf32>
    %200 = arith.divf %198, %199 : vector<1x32xf32>
    %201 = vector.extract_strided_slice %182 {offsets = [0, 64], sizes = [1, 32], strides = [1, 1]} : vector<1x96xf32> to vector<1x32xf32>
    %202 = vector.extract_strided_slice %184 {offsets = [0, 64], sizes = [1, 32], strides = [1, 1]} : vector<1x96xf32> to vector<1x32xf32>
    %203 = arith.mulf %192, %202 : vector<1x32xf32>
    %204 = arith.addf %201, %203 : vector<1x32xf32>
    %205 = math.tanh %204 : vector<1x32xf32>
    %cst_67 = arith.constant 1.000000e+00 : f32
    %206 = vector.broadcast %cst_67 : f32 to vector<1x32xf32>
    %207 = arith.subf %206, %200 : vector<1x32xf32>
    %208 = arith.mulf %207, %205 : vector<1x32xf32>
    %209 = arith.mulf %200, %178 : vector<1x32xf32>
    %210 = arith.addf %208, %209 : vector<1x32xf32>
    %c5_i32 = arith.constant 5 : i32
    %211 = arith.index_cast %c5_i32 : i32 to index
    %c0_68 = arith.constant 0 : index
    %212 = vector.load %arg2[%211, %c0_68] : memref<8x16xf32, #tpu.memory_space<vmem>>, vector<1x16xf32>
    %cst_69 = arith.constant dense<0.000000e+00> : vector<1x96xf32>
    %213 = tpu.matmul %212, %46, %cst_69 {dimension_numbers = #tpu.dot_dimension_numbers<[1], [0], [0], [1], [0, 0, 1, 1], [], []>} : vector<1x16xf32>, vector<16x96xf32>, vector<1x96xf32> -> vector<1x96xf32>
    %214 = arith.addf %213, %48 : vector<1x96xf32>
    %cst_70 = arith.constant dense<0.000000e+00> : vector<1x96xf32>
    %215 = tpu.matmul %210, %47, %cst_70 {dimension_numbers = #tpu.dot_dimension_numbers<[1], [0], [0], [1], [0, 0, 1, 1], [], []>} : vector<1x32xf32>, vector<32x96xf32>, vector<1x96xf32> -> vector<1x96xf32>
    %216 = arith.addf %215, %49 : vector<1x96xf32>
    %217 = vector.extract_strided_slice %214 {offsets = [0, 0], sizes = [1, 32], strides = [1, 1]} : vector<1x96xf32> to vector<1x32xf32>
    %218 = vector.extract_strided_slice %216 {offsets = [0, 0], sizes = [1, 32], strides = [1, 1]} : vector<1x96xf32> to vector<1x32xf32>
    %219 = arith.addf %217, %218 : vector<1x32xf32>
    %220 = arith.negf %219 : vector<1x32xf32>
    %221 = math.exp %220 : vector<1x32xf32>
    %cst_71 = arith.constant 1.000000e+00 : f32
    %222 = vector.broadcast %cst_71 : f32 to vector<1x32xf32>
    %223 = arith.addf %222, %221 : vector<1x32xf32>
    %224 = arith.divf %222, %223 : vector<1x32xf32>
    %225 = vector.extract_strided_slice %214 {offsets = [0, 32], sizes = [1, 32], strides = [1, 1]} : vector<1x96xf32> to vector<1x32xf32>
    %226 = vector.extract_strided_slice %216 {offsets = [0, 32], sizes = [1, 32], strides = [1, 1]} : vector<1x96xf32> to vector<1x32xf32>
    %227 = arith.addf %225, %226 : vector<1x32xf32>
    %228 = arith.negf %227 : vector<1x32xf32>
    %229 = math.exp %228 : vector<1x32xf32>
    %cst_72 = arith.constant 1.000000e+00 : f32
    %230 = vector.broadcast %cst_72 : f32 to vector<1x32xf32>
    %231 = arith.addf %230, %229 : vector<1x32xf32>
    %232 = arith.divf %230, %231 : vector<1x32xf32>
    %233 = vector.extract_strided_slice %214 {offsets = [0, 64], sizes = [1, 32], strides = [1, 1]} : vector<1x96xf32> to vector<1x32xf32>
    %234 = vector.extract_strided_slice %216 {offsets = [0, 64], sizes = [1, 32], strides = [1, 1]} : vector<1x96xf32> to vector<1x32xf32>
    %235 = arith.mulf %224, %234 : vector<1x32xf32>
    %236 = arith.addf %233, %235 : vector<1x32xf32>
    %237 = math.tanh %236 : vector<1x32xf32>
    %cst_73 = arith.constant 1.000000e+00 : f32
    %238 = vector.broadcast %cst_73 : f32 to vector<1x32xf32>
    %239 = arith.subf %238, %232 : vector<1x32xf32>
    %240 = arith.mulf %239, %237 : vector<1x32xf32>
    %241 = arith.mulf %232, %210 : vector<1x32xf32>
    %242 = arith.addf %240, %241 : vector<1x32xf32>
    %c6_i32 = arith.constant 6 : i32
    %243 = arith.index_cast %c6_i32 : i32 to index
    %c0_74 = arith.constant 0 : index
    %244 = vector.load %arg2[%243, %c0_74] : memref<8x16xf32, #tpu.memory_space<vmem>>, vector<1x16xf32>
    %cst_75 = arith.constant dense<0.000000e+00> : vector<1x96xf32>
    %245 = tpu.matmul %244, %46, %cst_75 {dimension_numbers = #tpu.dot_dimension_numbers<[1], [0], [0], [1], [0, 0, 1, 1], [], []>} : vector<1x16xf32>, vector<16x96xf32>, vector<1x96xf32> -> vector<1x96xf32>
    %246 = arith.addf %245, %48 : vector<1x96xf32>
    %cst_76 = arith.constant dense<0.000000e+00> : vector<1x96xf32>
    %247 = tpu.matmul %242, %47, %cst_76 {dimension_numbers = #tpu.dot_dimension_numbers<[1], [0], [0], [1], [0, 0, 1, 1], [], []>} : vector<1x32xf32>, vector<32x96xf32>, vector<1x96xf32> -> vector<1x96xf32>
    %248 = arith.addf %247, %49 : vector<1x96xf32>
    %249 = vector.extract_strided_slice %246 {offsets = [0, 0], sizes = [1, 32], strides = [1, 1]} : vector<1x96xf32> to vector<1x32xf32>
    %250 = vector.extract_strided_slice %248 {offsets = [0, 0], sizes = [1, 32], strides = [1, 1]} : vector<1x96xf32> to vector<1x32xf32>
    %251 = arith.addf %249, %250 : vector<1x32xf32>
    %252 = arith.negf %251 : vector<1x32xf32>
    %253 = math.exp %252 : vector<1x32xf32>
    %cst_77 = arith.constant 1.000000e+00 : f32
    %254 = vector.broadcast %cst_77 : f32 to vector<1x32xf32>
    %255 = arith.addf %254, %253 : vector<1x32xf32>
    %256 = arith.divf %254, %255 : vector<1x32xf32>
    %257 = vector.extract_strided_slice %246 {offsets = [0, 32], sizes = [1, 32], strides = [1, 1]} : vector<1x96xf32> to vector<1x32xf32>
    %258 = vector.extract_strided_slice %248 {offsets = [0, 32], sizes = [1, 32], strides = [1, 1]} : vector<1x96xf32> to vector<1x32xf32>
    %259 = arith.addf %257, %258 : vector<1x32xf32>
    %260 = arith.negf %259 : vector<1x32xf32>
    %261 = math.exp %260 : vector<1x32xf32>
    %cst_78 = arith.constant 1.000000e+00 : f32
    %262 = vector.broadcast %cst_78 : f32 to vector<1x32xf32>
    %263 = arith.addf %262, %261 : vector<1x32xf32>
    %264 = arith.divf %262, %263 : vector<1x32xf32>
    %265 = vector.extract_strided_slice %246 {offsets = [0, 64], sizes = [1, 32], strides = [1, 1]} : vector<1x96xf32> to vector<1x32xf32>
    %266 = vector.extract_strided_slice %248 {offsets = [0, 64], sizes = [1, 32], strides = [1, 1]} : vector<1x96xf32> to vector<1x32xf32>
    %267 = arith.mulf %256, %266 : vector<1x32xf32>
    %268 = arith.addf %265, %267 : vector<1x32xf32>
    %269 = math.tanh %268 : vector<1x32xf32>
    %cst_79 = arith.constant 1.000000e+00 : f32
    %270 = vector.broadcast %cst_79 : f32 to vector<1x32xf32>
    %271 = arith.subf %270, %264 : vector<1x32xf32>
    %272 = arith.mulf %271, %269 : vector<1x32xf32>
    %273 = arith.mulf %264, %242 : vector<1x32xf32>
    %274 = arith.addf %272, %273 : vector<1x32xf32>
    %c7_i32 = arith.constant 7 : i32
    %275 = arith.index_cast %c7_i32 : i32 to index
    %c0_80 = arith.constant 0 : index
    %276 = vector.load %arg2[%275, %c0_80] : memref<8x16xf32, #tpu.memory_space<vmem>>, vector<1x16xf32>
    %cst_81 = arith.constant dense<0.000000e+00> : vector<1x96xf32>
    %277 = tpu.matmul %276, %46, %cst_81 {dimension_numbers = #tpu.dot_dimension_numbers<[1], [0], [0], [1], [0, 0, 1, 1], [], []>} : vector<1x16xf32>, vector<16x96xf32>, vector<1x96xf32> -> vector<1x96xf32>
    %278 = arith.addf %277, %48 : vector<1x96xf32>
    %cst_82 = arith.constant dense<0.000000e+00> : vector<1x96xf32>
    %279 = tpu.matmul %274, %47, %cst_82 {dimension_numbers = #tpu.dot_dimension_numbers<[1], [0], [0], [1], [0, 0, 1, 1], [], []>} : vector<1x32xf32>, vector<32x96xf32>, vector<1x96xf32> -> vector<1x96xf32>
    %280 = arith.addf %279, %49 : vector<1x96xf32>
    %281 = vector.extract_strided_slice %278 {offsets = [0, 0], sizes = [1, 32], strides = [1, 1]} : vector<1x96xf32> to vector<1x32xf32>
    %282 = vector.extract_strided_slice %280 {offsets = [0, 0], sizes = [1, 32], strides = [1, 1]} : vector<1x96xf32> to vector<1x32xf32>
    %283 = arith.addf %281, %282 : vector<1x32xf32>
    %284 = arith.negf %283 : vector<1x32xf32>
    %285 = math.exp %284 : vector<1x32xf32>
    %cst_83 = arith.constant 1.000000e+00 : f32
    %286 = vector.broadcast %cst_83 : f32 to vector<1x32xf32>
    %287 = arith.addf %286, %285 : vector<1x32xf32>
    %288 = arith.divf %286, %287 : vector<1x32xf32>
    %289 = vector.extract_strided_slice %278 {offsets = [0, 32], sizes = [1, 32], strides = [1, 1]} : vector<1x96xf32> to vector<1x32xf32>
    %290 = vector.extract_strided_slice %280 {offsets = [0, 32], sizes = [1, 32], strides = [1, 1]} : vector<1x96xf32> to vector<1x32xf32>
    %291 = arith.addf %289, %290 : vector<1x32xf32>
    %292 = arith.negf %291 : vector<1x32xf32>
    %293 = math.exp %292 : vector<1x32xf32>
    %cst_84 = arith.constant 1.000000e+00 : f32
    %294 = vector.broadcast %cst_84 : f32 to vector<1x32xf32>
    %295 = arith.addf %294, %293 : vector<1x32xf32>
    %296 = arith.divf %294, %295 : vector<1x32xf32>
    %297 = vector.extract_strided_slice %278 {offsets = [0, 64], sizes = [1, 32], strides = [1, 1]} : vector<1x96xf32> to vector<1x32xf32>
    %298 = vector.extract_strided_slice %280 {offsets = [0, 64], sizes = [1, 32], strides = [1, 1]} : vector<1x96xf32> to vector<1x32xf32>
    %299 = arith.mulf %288, %298 : vector<1x32xf32>
    %300 = arith.addf %297, %299 : vector<1x32xf32>
    %301 = math.tanh %300 : vector<1x32xf32>
    %cst_85 = arith.constant 1.000000e+00 : f32
    %302 = vector.broadcast %cst_85 : f32 to vector<1x32xf32>
    %303 = arith.subf %302, %296 : vector<1x32xf32>
    %304 = arith.mulf %303, %301 : vector<1x32xf32>
    %305 = arith.mulf %296, %274 : vector<1x32xf32>
    %306 = arith.addf %304, %305 : vector<1x32xf32>
    %c8_i32 = arith.constant 8 : i32
    %c0_86 = arith.constant 0 : index
    %c0_87 = arith.constant 0 : index
    %307 = vector.load %arg21[%c0_86, %c0_87] : memref<1x32xf32, #tpu.memory_space<vmem>>, vector<1x32xf32>
    tpu.vector_store %arg21[%c0_86, %c0_87], %306 {strides = array<i32>} : memref<1x32xf32, #tpu.memory_space<vmem>>, vector<1x32xf32>,
    %cst_88 = arith.constant 6.250000e-02 : f32
    %308 = vector.broadcast %cst_88 : f32 to vector<1x16xf32>
    %cst_89 = arith.constant dense<0.000000e+00> : vector<1x32xf32>
    %309 = tpu.matmul %308, %44, %cst_89 {dimension_numbers = #tpu.dot_dimension_numbers<[1], [0], [0], [1], [0, 0, 1, 1], [], []>} : vector<1x16xf32>, vector<16x32xf32>, vector<1x32xf32> -> vector<1x32xf32>
    %c0_90 = arith.constant 0 : index
    %c0_91 = arith.constant 0 : index
    %310 = vector.load %arg11[%c0_90, %c0_91] : memref<32x64xf32, #tpu.memory_space<vmem>>, vector<32x64xf32>
    %cst_92 = arith.constant dense<0.000000e+00> : vector<1x64xf32>
    %311 = tpu.matmul %306, %310, %cst_92 {dimension_numbers = #tpu.dot_dimension_numbers<[1], [0], [0], [1], [0, 0, 1, 1], [], []>} : vector<1x32xf32>, vector<32x64xf32>, vector<1x64xf32> -> vector<1x64xf32>
    %c0_93 = arith.constant 0 : index
    %c0_94 = arith.constant 0 : index
    %312 = vector.load %arg12[%c0_93, %c0_94] : memref<32x32xf32, #tpu.memory_space<vmem>>, vector<32x32xf32>
    %cst_95 = arith.constant dense<0.000000e+00> : vector<1x32xf32>
    %313 = tpu.matmul %309, %312, %cst_95 {dimension_numbers = #tpu.dot_dimension_numbers<[1], [0], [0], [1], [0, 0, 1, 1], [], []>} : vector<1x32xf32>, vector<32x32xf32>, vector<1x32xf32> -> vector<1x32xf32>
    %c0_96 = arith.constant 0 : index
    %c0_97 = arith.constant 0 : index
    %314 = vector.load %arg13[%c0_96, %c0_97] : memref<32x32xf32, #tpu.memory_space<vmem>>, vector<32x32xf32>
    %cst_98 = arith.constant dense<0.000000e+00> : vector<16x32xf32>
    %315 = tpu.matmul %44, %314, %cst_98 {dimension_numbers = #tpu.dot_dimension_numbers<[1], [0], [0], [1], [0, 0, 1, 1], [], []>} : vector<16x32xf32>, vector<32x32xf32>, vector<16x32xf32> -> vector<16x32xf32>
    %316 = vector.extract_strided_slice %311 {offsets = [0, 0], sizes = [1, 32], strides = [1, 1]} : vector<1x64xf32> to vector<1x32xf32>
    %317 = arith.addf %316, %313 : vector<1x32xf32>
    %c0_99 = arith.constant 0 : index
    %c0_100 = arith.constant 0 : index
    %318 = vector.load %arg14[%c0_99, %c0_100] : memref<1x32xf32, #tpu.memory_space<vmem>>, vector<1x32xf32>
    %319 = arith.addf %317, %318 : vector<1x32xf32>
    %cst_101 = arith.constant 0.000000e+00 : f32
    %320 = vector.broadcast %cst_101 : f32 to vector<1x32xf32>
    %321 = arith.maximumf %319, %320 : vector<1x32xf32>
    %322 = vector.extract_strided_slice %311 {offsets = [0, 32], sizes = [1, 32], strides = [1, 1]} : vector<1x64xf32> to vector<1x32xf32>
    %323 = vector.broadcast %322 : vector<1x32xf32> to vector<16x32xf32>
    %324 = arith.addf %315, %323 : vector<16x32xf32>
    %c0_102 = arith.constant 0 : index
    %c0_103 = arith.constant 0 : index
    %325 = vector.load %arg15[%c0_102, %c0_103] : memref<1x32xf32, #tpu.memory_space<vmem>>, vector<1x32xf32>
    %326 = vector.broadcast %325 : vector<1x32xf32> to vector<16x32xf32>
    %327 = arith.addf %324, %326 : vector<16x32xf32>
    %cst_104 = arith.constant 0.000000e+00 : f32
    %328 = vector.broadcast %cst_104 : f32 to vector<16x32xf32>
    %329 = arith.maximumf %327, %328 : vector<16x32xf32>
    %c0_105 = arith.constant 0 : index
    %c0_106 = arith.constant 0 : index
    %330 = vector.load %arg22[%c0_105, %c0_106] : memref<1x32xf32, #tpu.memory_space<vmem>>, vector<1x32xf32>
    tpu.vector_store %arg22[%c0_105, %c0_106], %321 {strides = array<i32>} : memref<1x32xf32, #tpu.memory_space<vmem>>, vector<1x32xf32>,
    %c0_107 = arith.constant 0 : index
    %c0_108 = arith.constant 0 : index
    %331 = vector.load %arg23[%c0_107, %c0_108] : memref<16x32xf32, #tpu.memory_space<vmem>>, vector<16x32xf32>
    tpu.vector_store %arg23[%c0_107, %c0_108], %329 {strides = array<i32>} : memref<16x32xf32, #tpu.memory_space<vmem>>, vector<16x32xf32>,
    %c0_109 = arith.constant 0 : index
    %c0_110 = arith.constant 0 : index
    %332 = vector.load %arg3[%c0_109, %c0_110] : memref<4x16xf32, #tpu.memory_space<vmem>>, vector<4x16xf32>
    %cst_111 = arith.constant dense<0.000000e+00> : vector<4x32xf32>
    %333 = tpu.matmul %332, %329, %cst_111 {dimension_numbers = #tpu.dot_dimension_numbers<[1], [0], [0], [1], [0, 0, 1, 1], [], []>} : vector<4x16xf32>, vector<16x32xf32>, vector<4x32xf32> -> vector<4x32xf32>
    %c0_112 = arith.constant 0 : index
    %c0_113 = arith.constant 0 : index
    %334 = vector.load %arg24[%c0_112, %c0_113] : memref<4x32xf32, #tpu.memory_space<vmem>>, vector<4x32xf32>
    tpu.vector_store %arg24[%c0_112, %c0_113], %333 {strides = array<i32>} : memref<4x32xf32, #tpu.memory_space<vmem>>, vector<4x32xf32>,
    %c0_114 = arith.constant 0 : index
    %c0_115 = arith.constant 0 : index
    %335 = vector.load %arg16[%c0_114, %c0_115] : memref<32x1xf32, #tpu.memory_space<vmem>>, vector<32x1xf32>
    %cst_116 = arith.constant dense<0.000000e+00> : vector<4x1xf32>
    %336 = tpu.matmul %333, %335, %cst_116 {dimension_numbers = #tpu.dot_dimension_numbers<[1], [0], [0], [1], [0, 0, 1, 1], [], []>} : vector<4x32xf32>, vector<32x1xf32>, vector<4x1xf32> -> vector<4x1xf32>
    %c0_117 = arith.constant 0 : index
    %c0_118 = arith.constant 0 : index
    %337 = vector.load %arg17[%c0_117, %c0_118] : memref<1x1xf32, #tpu.memory_space<vmem>>, vector<1x1xf32>
    %338 = vector.broadcast %337 : vector<1x1xf32> to vector<4x1xf32>
    %339 = arith.addf %336, %338 : vector<4x1xf32>
    %c0_119 = arith.constant 0 : index
    %c0_120 = arith.constant 0 : index
    %340 = vector.load %arg25[%c0_119, %c0_120] : memref<4x1xf32, #tpu.memory_space<vmem>>, vector<4x1xf32>
    tpu.vector_store %arg25[%c0_119, %c0_120], %339 {strides = array<i32>} : memref<4x1xf32, #tpu.memory_space<vmem>>, vector<4x1xf32>,
    return
  }
}

</mosaic_0001>

<bundles_post_ra>
// kernel: multi_modal_gnn_forward.1
= control target key start
LH: loop header
LB: loop body
LE: loop exit
PB: predicated region body
PF: predicated region fallthrough
CT: control target
= control target key end

     0   :  { %s4442_s0 = inlined_call_operand.vmem [shape: f32[16,16], index: 0, kind: input, shape index: {}]   ;;  %s4443_s1 = inlined_call_operand.vmem [shape: f32[16,32], index: 1, kind: input, shape index: {}]   ;;  %s4444_s2 = inlined_call_operand.vmem [shape: f32[8,16], index: 2, kind: input, shape index: {}]   ;;  %s4445_s3 = inlined_call_operand.vmem [shape: f32[4,16], index: 3, kind: input, shape index: {}]   ;;  %s4446_s4 = inlined_call_operand.vmem [shape: f32[32,32], index: 4, kind: input, shape index: {}]   ;;  %s4447_s5 = inlined_call_operand.vmem [shape: f32[32,32], index: 5, kind: input, shape index: {}]   ;;  %s4448_s6 = inlined_call_operand.vmem [shape: f32[32,32], index: 6, kind: input, shape index: {}]   ;;  %s4449_s7 = inlined_call_operand.hbm [shape: f32[16,96], index: 7, kind: input, shape index: {}]   ;;  %s4450_s8 = inlined_call_operand.hbm [shape: f32[32,96], index: 8, kind: input, shape index: {}]   ;;  %s4451_s9 = inlined_call_operand.hbm [shape: f32[1,96], index: 9, kind: input, shape index: {}]   ;;  %s4452_s10 = inlined_call_operand.hbm [shape: f32[1,96], index: 10, kind: input, shape index: {}]   ;;  %s4453_s11 = inlined_call_operand.vmem [shape: f32[32,64], index: 11, kind: input, shape index: {}]   ;;  %s4454_s12 = inlined_call_operand.vmem [shape: f32[32,32], index: 12, kind: input, shape index: {}]   ;;  %s4455_s13 = inlined_call_operand.hbm [shape: f32[32,32], index: 13, kind: input, shape index: {}]   ;;  %s4456_s14 = inlined_call_operand.vmem [shape: f32[1,32], index: 14, kind: input, shape index: {}]   ;;  %s4457_s15 = inlined_call_operand.vmem [shape: f32[1,32], index: 15, kind: input, shape index: {}]   ;;  %s4458_s16 = inlined_call_operand.vmem [shape: f32[32,1], index: 16, kind: input, shape index: {}]   ;;  %s4459_s17 = inlined_call_operand.<no memory space> [shape: f32[1,1], index: 17, kind: input, shape index: {}]   ;;  %s4460_s18 = inlined_call_operand.hbm [shape: f32[16,32], index: 18, kind: output, shape index: {0}]   ;;  %s4461_s19 = inlined_call_operand.hbm [shape: f32[16,16], index: 19, kind: output, shape index: {1}]   ;;  %s4462_s20 = inlined_call_operand.hbm [shape: f32[16,32], index: 20, kind: output, shape index: {2}]   ;;  %s4463_s21 = inlined_call_operand.hbm [shape: f32[1,32], index: 21, kind: output, shape index: {3}]   ;;  %s4464_s22 = inlined_call_operand.hbm [shape: f32[1,32], index: 22, kind: output, shape index: {4}]   ;;  %s4465_s23 = inlined_call_operand.hbm [shape: f32[16,32], index: 23, kind: output, shape index: {5}]   ;;  %s4466_s24 = inlined_call_operand.hbm [shape: f32[4,32], index: 24, kind: output, shape index: {6}]   ;;  %s4467_s25 = inlined_call_operand.vmem [shape: f32[4,1], index: 25, kind: output, shape index: {7}]  }
   0x1   :  { %4479 = sst [smem:[#allocation29_spill]] %s4442_s0  ;;  %v31_v0 = vstv %s4459_s17 }
   0x2   :  { %4480 = sst [smem:[#allocation30_spill]] %s4443_s1  ;;  %32 = vst [vmem:[#allocation2] sm:$0x1] %v31_v0 }
   0x3   :  { %4481 = sst [smem:[#allocation31_spill]] %s4444_s2 }
   0x4   :  { %4482 = sst [smem:[#allocation32_spill]] %s4445_s3 }
   0x5   :  { %4483 = sst [smem:[#allocation33_spill]] %s4446_s4 }
   0x6   :  { %4484 = sst [smem:[#allocation34_spill]] %s4447_s5 }
   0x7   :  { %4485 = sst [smem:[#allocation35_spill]] %s4448_s6 }
   0x8   :  { %4486 = sst [smem:[#allocation36_spill]] %s4449_s7 }
   0x9   :  { %4487 = sst [smem:[#allocation37_spill]] %s4450_s8 }
   0xa   :  { %4488 = sst [smem:[#allocation38_spill]] %s4451_s9 }
   0xb   :  { %33 = vsyncpa [#allocation4], 0 }
   0xc   :  { %34 = vsyncpa [#allocation7], 0 }
   0xd   :  { %35 = vsyncpa [#allocation10], 0 }
   0xe   :  { %36 = vsyncpa [#allocation5], 0 }
   0xf   :  { %37 = vsyncpa [#allocation14], 0 }
  0x10   :  { %38 = vsyncpa [#allocation17], 0 }
  0x11   :  { %39 = vsyncpa [#allocation20], 0  ;;  %s3761_s6 = smov [#allocation6]   ;;  %s3762_s7 = smov [#allocation9]  }
  0x12   :  { %s71_s30 = sshll.u32 %s3761_s6, 4  ;;  %s94_s3 = sshll.u32 %s3762_s7, 4  ;;  %s72_s30 = int_to_ptr.vmem [resolvable:$true] %s71_s30  ;;  %s3914_s3 = int_to_ptr.vmem [resolvable:$true] %s94_s3 }
  0x13   :  { %s4489_s8 = sld [smem:[#allocation37_spill]] }
  0x19   :  { %s3483_s27 = scalar_lea.hbm %s4489_s8, 512 }
  0x1a   :  { %p3484_p0 = scmp.ne.s32.totalorder %s4489_s8, %s3483_s27  ;;  %p3487_p1 = scmp.lt.u32.totalorder %s3483_s27, %s4489_s8 }
  0x1c   :  { %p3489_p2 = pnand %p3487_p1, %p3484_p0 }
  0x1e   :  { %3492 = shalt.err (!%p3489_p2)
}
  0x1f   :  { %s3493_s5 = scalar_lea.vmem %s72_s30, 512  ;;  %p3498_p4 = scmp.lt.s32.totalorder %s72_s30, %s72_s30 }
  0x20   :  { %p3494_p3 = scmp.ne.s32.totalorder %s72_s30, %s3493_s5  ;;  %p3499_p5 = scmp.lt.s32.totalorder %s3493_s5, %s3493_s5 }
  0x22   :  { %p3500_p6 = por %p3499_p5, %p3498_p4 }
  0x24   :  { %p3501_p7 = pnand %p3500_p6, %p3494_p3 }
  0x26   :  { %3504 = shalt.err (!%p3501_p7)
}
  0x27   :  { %s4477_s0 = smov 128   ;;  %s3764_s29 = smov 8  }
  0x28   :  { %77 = dma.hbm_to_vmem [thread:$0]  %s4489_s8, 512, %s72_s30, [#allocation7], %s4477_s0, %s4477_s0, %s3764_s29  }
  0x29   :  { %s3505_s1 = scalar_lea.hbm %s4452_s10, 16 }
  0x2a   :  { %p3506_p8 = scmp.ne.s32.totalorder %s4452_s10, %s3505_s1  ;;  %p3509_p9 = scmp.lt.u32.totalorder %s3505_s1, %s4452_s10 }
  0x2c   :  { %p3511_p10 = pnand %p3509_p9, %p3506_p8 }
  0x2e   :  { %3514 = shalt.err (!%p3511_p10)
}
  0x2f   :  { %s3515_s9 = scalar_lea.vmem %s3914_s3, 16  ;;  %s3519_s30 = scalar_lea.vmem %s3914_s3, 32 }
  0x30   :  { %p3516_p11 = scmp.ne.s32.totalorder %s3914_s3, %s3515_s9  ;;  %p3520_p12 = scmp.lt.s32.totalorder %s3914_s3, %s3914_s3 }
  0x31   :  { %p3521_p13 = scmp.lt.s32.totalorder %s3519_s30, %s3515_s9 }
  0x33   :  { %p3522_p0 = por %p3521_p13, %p3520_p12 }
  0x35   :  { %p3523_p1 = pnand %p3522_p0, %p3516_p11 }
  0x37   :  { %3526 = shalt.err (!%p3523_p1)
}
  0x38   :  { %97 = dma.hbm_to_vmem [thread:$0]  %s4452_s10, 16, %s3914_s3, [#allocation10]  }
  0x39   :  { %s3765_s2 = smov [#allocation3]   ;;  %s3766_s7 = smov [#allocation8]  }
  0x3a   :  { %s59_s6 = sshll.u32 %s3765_s2, 4  ;;  %s84_s26 = sshll.u32 %s3766_s7, 4  ;;  %s60_s6 = int_to_ptr.vmem [resolvable:$true] %s59_s6  ;;  %s85_s26 = int_to_ptr.vmem [resolvable:$true] %s84_s26 }
  0x3b   :  { %s4490_s17 = sld [smem:[#allocation36_spill]] }
  0x41   :  { %s3527_s4 = scalar_lea.hbm %s4490_s17, 256 }
  0x42   :  { %p3528_p2 = scmp.ne.s32.totalorder %s4490_s17, %s3527_s4  ;;  %p3531_p3 = scmp.lt.u32.totalorder %s3527_s4, %s4490_s17 }
  0x44   :  { %p3533_p4 = pnand %p3531_p3, %p3528_p2 }
  0x46   :  { %3536 = shalt.err (!%p3533_p4)
}
  0x47   :  { %s3537_s10 = scalar_lea.vmem %s60_s6, 256  ;;  %p3542_p6 = scmp.lt.s32.totalorder %s60_s6, %s60_s6 }
  0x48   :  { %p3538_p5 = scmp.ne.s32.totalorder %s60_s6, %s3537_s10  ;;  %p3543_p7 = scmp.lt.s32.totalorder %s3537_s10, %s3537_s10 }
  0x4a   :  { %p3544_p8 = por %p3543_p7, %p3542_p6 }
  0x4c   :  { %p3545_p9 = pnand %p3544_p8, %p3538_p5 }
  0x4e   :  { %3548 = shalt.err (!%p3545_p9)
}
  0x4f   :  { %s4491_s3 = smov 128   ;;  %s4492_s0 = sld [smem:[#allocation38_spill]] }
  0x50   :  { %65 = dma.hbm_to_vmem [thread:$0]  %s4490_s17, 256, %s60_s6, [#allocation4], %s4491_s3, %s4491_s3, %s3764_s29  }
  0x55   :  { %s3549_s1 = scalar_lea.hbm %s4492_s0, 16 }
  0x56   :  { %p3550_p10 = scmp.ne.s32.totalorder %s4492_s0, %s3549_s1  ;;  %p3553_p11 = scmp.lt.u32.totalorder %s3549_s1, %s4492_s0 }
  0x58   :  { %p3555_p12 = pnand %p3553_p11, %p3550_p10 }
  0x5a   :  { %3558 = shalt.err (!%p3555_p12)
}
  0x5b   :  { %s3559_s30 = scalar_lea.vmem %s85_s26, 16  ;;  %s3563_s10 = scalar_lea.vmem %s85_s26, 32 }
  0x5c   :  { %p3560_p13 = scmp.ne.s32.totalorder %s85_s26, %s3559_s30  ;;  %p3564_p0 = scmp.lt.s32.totalorder %s85_s26, %s85_s26 }
  0x5d   :  { %p3565_p1 = scmp.lt.s32.totalorder %s3563_s10, %s3559_s30 }
  0x5f   :  { %p3566_p2 = por %p3565_p1, %p3564_p0 }
  0x61   :  { %p3567_p3 = pnand %p3566_p2, %p3560_p13 }
  0x63   :  { %3570 = shalt.err (!%p3567_p3)
}
  0x64   :  { %87 = dma.hbm_to_vmem [thread:$0]  %s4492_s0, 16, %s85_s26, [#allocation7]  }
  0x65   :  { %s3767_s8 = smov [#allocation11]   ;;  %s3571_s1 = scalar_lea.hbm %s4455_s13, 512 }
  0x66   :  { %s107_s5 = sshll.u32 %s3767_s8, 4  ;;  %p3572_p4 = scmp.ne.s32.totalorder %s4455_s13, %s3571_s1  ;;  %s108_s5 = int_to_ptr.vmem [resolvable:$true] %s107_s5 }
  0x67   :  { %p3575_p5 = scmp.lt.u32.totalorder %s3571_s1, %s4455_s13 }
  0x69   :  { %p3577_p6 = pnand %p3575_p5, %p3572_p4 }
  0x6b   :  { %3580 = shalt.err (!%p3577_p6)
}
  0x6c   :  { %s3581_s30 = scalar_lea.vmem %s108_s5, 512  ;;  %p3586_p8 = scmp.lt.s32.totalorder %s108_s5, %s108_s5 }
  0x6d   :  { %p3582_p7 = scmp.ne.s32.totalorder %s108_s5, %s3581_s30  ;;  %p3587_p9 = scmp.lt.s32.totalorder %s3581_s30, %s3581_s30 }
  0x6f   :  { %p3588_p10 = por %p3587_p9, %p3586_p8 }
  0x71   :  { %p3589_p11 = pnand %p3588_p10, %p3582_p7 }
  0x73   :  { %3592 = shalt.err (!%p3589_p11)
}
  0x74   :  { %113 = dma.hbm_to_vmem [thread:$0]  %s4455_s13, 512, %s108_s5, [#allocation10], %s4491_s3, %s4491_s3, %s3764_s29  }
  0x75   :  { %3747 = dma.done.wait [#allocation4], 256  }
  0x76   :  { %3748 = vsyncadd [#allocation4], 4294967040 }
  0x77   :  { %3749 = dma.done.wait [#allocation7], 528  }
  0x78   :  { %3750 = vsyncadd [#allocation7], 4294966768 }
  0x79   :  { %3751 = dma.done.wait [#allocation10], 528  }
  0x7a   :  { %3752 = vsyncadd [#allocation10], 4294966768  ;;  %vm145_vm0 = vcmask 261120   ;;  %s4493_s17 = sld [smem:[#allocation33_spill]]  ;;  %s4494_s28 = sld [smem:[#allocation30_spill]]  ;;  %vm227_vm1 = vcmask 130048   ;;  %v564_v40 = vlaneseq }
  0x7b   :  { %s4495_s10 = sld [smem:[#allocation29_spill]]  ;;  %s4496_s8 = sld [smem:[#allocation34_spill]]  ;;  %vm3282_vm2 = vmpackc.low %vm145_vm0, %vm145_vm0  ;;  %vm575_vm3 = vcmask 130112   ;;  %vm3769_vm8 = vmmov 0   ;;  %vm2210_vm9 = vcmask 253952   ;;  %vm2623_vm10 = vcmask 257024  }
  0x7c   :  { %s4497_s26 = sld [smem:[#allocation35_spill]]  ;;  %v565_v41 = vand.u32 127, %v564_v40  ;;  %v4057_v44 = vshrl.u32 %v564_v40, 7  ;;  %s4498_s13 = sld [smem:[#allocation31_spill]]  ;;  %v805_v40 = vld [vmem:[#allocation6 + $0x18] sm:$0xff] }
  0x7d   :  { %s3771_s27 = smov 64   ;;  %s3772_s9 = smov 96  }
  0x7e   :  { %v570_v43 = vadd.s32 4294967288, %v565_v41  ;;  %v568_v48 = vsub.s32 %v565_v41, %v4057_v44  ;;  %s3774_s7 = smov [#allocation13]  }
  0x7f   :  { %s2728_s1 = sshll.u32 %s3774_s7, 4  ;;  %s2729_s1 = int_to_ptr.vmem [resolvable:$true] %s2728_s1 }
  0x80   :  { %v141_v1 = vld [vmem:[%s4493_s17] sm:$0xff]  ;;  %v142_v2 = vld [vmem:[%s4493_s17 + $0x8] sm:$0xff]  ;;  %v143_v3 = vld [vmem:[%s4493_s17 + $0x10] sm:$0xff]  ;;  %v573_v45 = vsub.s32 %v570_v43, %v4057_v44  ;;  %s3593_s4 = scalar_lea.vmem %s2729_s1, 256  ;;  %p3598_p13 = scmp.lt.s32.totalorder %s2729_s1, %s2729_s1 }
  0x81   :  { %v3257_v4 = vpack.c.bf16 %v142_v2, %v141_v1  ;;  %v144_v5 = vld [vmem:[%s4493_s17 + $0x18] sm:$0xff]  ;;  %v139_v6 = vld [vmem:[%s4494_s28] sm:$0xff]  ;;  %v140_v8 = vld [vmem:[%s4494_s28 + $0x8] sm:$0xff]  ;;  %p3594_p12 = scmp.ne.s32.totalorder %s2729_s1, %s3593_s4  ;;  %p3599_p0 = scmp.lt.s32.totalorder %s3593_s4, %s3593_s4 }
  0x82   :  { %v3261_v7 = vpack.c.bf16 %v144_v5, %v143_v3  ;;  %3002 = vmatprep.mubr.msk.f32.mxu0 %vm145_vm0, %v139_v6  ;;  %v137_v9 = vld [vmem:[%s4495_s10] sm:$0xff]  ;;  %v312_v11 = vld [vmem:[%s4496_s8 + $0x8] sm:$0xff]  ;;  %v313_v17 = vld [vmem:[%s4496_s8 + $0x10] sm:$0xff] }
  0x83   :  { %3258 = vmatprep.subr.bf16.mxu0 %v3257_v4  ;;  %3009 = vmatprep.mubr.msk.f32.mxu1 %vm227_vm1, %v137_v9  ;;  %v311_v10 = vld [vmem:[%s4496_s8] sm:$0xff]  ;;  %v138_v16 = vld [vmem:[%s4495_s10 + $0x8] sm:$0xff]  ;;  %v314_v18 = vld [vmem:[%s4496_s8 + $0x18] sm:$0xff]  ;;  %p3600_p1 = por %p3599_p0, %p3598_p13 }
  0x84   :  { %3260 = vmatpush3.bf16.msra.mxu0 %v3257_v4  ;;  %v3269_v15 = vpack.c.bf16 %v312_v11, %v311_v10  ;;  %v3273_v19 = vpack.c.bf16 %v314_v18, %v313_v17  ;;  %v638_v24 = vld [vmem:[%s4497_s26] sm:$0xff]  ;;  %v639_v25 = vld [vmem:[%s4497_s26 + $0x8] sm:$0xff]  ;;  %v640_v26 = vld [vmem:[%s4497_s26 + $0x10] sm:$0xff]  ;;  %v3770_v18 = vmov 0.0  }
  0x85   :  { %3262 = vmatprep.subr.bf16.mxu0 %v3261_v7  ;;  %v3287_v27 = vpack.c.bf16 %v639_v25, %v638_v24  ;;  %v641_v28 = vld [vmem:[%s4497_s26 + $0x18] sm:$0xff]  ;;  %v808_v17 = vld [vmem:[%s4498_s13] sm:$0x1]  ;;  %p3601_p2 = pnand %p3600_p1, %p3594_p12 }
  0x86   :  { %v3291_v29 = vpack.c.bf16 %v641_v28, %v640_v26 }
  0x88   :  { %3264 = vmatpush3.bf16.msra.mxu0 %v3261_v7 }
  0x8b   :  { %3003 = vmatmul.mubr.msk.f32.vlgmr.msra.gmra.mrb[0].mxu0 %vm145_vm0, %v140_v8 }
  0x8c   :  { %3027 = vmatprep.mubr.msk.f32.mxu0 %vm227_vm1, %v137_v9 }
 0x15e   :  { %v3004_v12 = vpop.f32.mrb[0].mxu0 }
 0x15f   :  { %v218_v13 = vpop.f32.mrb[1].mxu0 }
 0x160   :  { %v3265_v14 = vpack.c.bf16 %v3004_v12, %v218_v13  ;;  %v3768_v13 = vmov 0.0|0.0  }
 0x162   :  { %3266 = vmatprep.subr.bf16.mxu1 %v3265_v14 }
 0x163   :  { %3268 = vmatpush3.bf16.msra.mxu1 %v3265_v14  ;;  %v800_v14 = vld [vmem:[#allocation3] sm:$0xff] }
 0x164   :  { %3270 = vmatprep.subr.bf16.mxu1 %v3269_v15 }
 0x166   :  { %3010 = vmatmul.mubr.msk.f32.vlgmr.msra.gmra.mrb[0].mxu1 %vm227_vm1, %v138_v16 }
 0x167   :  { %3272 = vmatpush3.bf16.msra.mxu1 %v3269_v15  ;;  %v801_v15 = vld [vmem:[#allocation3 + $0x8] sm:$0xff] }
 0x168   :  { %3274 = vmatprep.subr.bf16.mxu1 %v3273_v19 }
 0x16b   :  { %3276 = vmatpush3.bf16.msra.mxu1 %v3273_v19 }
 0x16c   :  { %3288 = vmatprep.subr.bf16.mxu1 %v3287_v27 }
 0x239   :  { %v3011_v20 = vpop.f32.mrb[0].mxu1 }
 0x23a   :  { %v300_v21 = vpop.f32.mrb[1].mxu1  ;;  %v310_v23 = vmax.f32 %v3011_v20, 0.0 }
 0x23b   :  { %v309_v22 = vmax.f32 %v300_v21, 0.0 }
 0x23d   :  { %3020 = vmatprep.mubr.msk.f32.mxu1 %vm145_vm0, %v309_v22 }
 0x23e   :  { %3021 = vmatmul.mubr.msk.f32.vlgmr.msra.gmra.mrb[2].mxu1 %vm145_vm0, %v310_v23 }
 0x23f   :  { %3290 = vmatpush3.bf16.msra.mxu1 %v3287_v27 }
 0x240   :  { %3292 = vmatprep.subr.bf16.mxu1 %v3291_v29 }
 0x243   :  { %3294 = vmatpush3.bf16.msra.mxu1 %v3291_v29 }
 0x244   :  { %3299 = vmatprep.subr.bf16.mxu1 %v3768_v13 }
 0x311   :  { %v3022_v30 = vpop.f32.mrb[2].mxu1 }
 0x312   :  { %v387_v31 = vpop.f32.mrb[3].mxu1 }
 0x313   :  { %v3277_v32 = vpack.c.bf16 %v3022_v30, %v387_v31 }
 0x315   :  { %3278 = vmatprep.subr.bf16.mxu0 %v3277_v32 }
 0x316   :  { %3280 = vmatpush3.bf16.msra.mxu0 %v3277_v32 }
 0x319   :  { %3028 = vmatmul.mubr.msk.f32.vlgmr.msra.gmra.mrb[2].mxu0 %vm227_vm1, %v138_v16  ;;  %v4065_v16 = vpack.c.bf16 %v801_v15, %v800_v14 }
 0x3ec   :  { %v3029_v33 = vpop.f32.mrb[2].mxu0 }
 0x3ed   :  { %472 = vst.msk [vmem:[#allocation12 + $0x8] sm:$0xff] %vm145_vm0, %v3029_v33  ;;  %v462_v34 = vpop.f32.mrb[3].mxu0  ;;  %v474_v38 = vmul.f32 %v3029_v33, %v3029_v33 }
 0x3ee   :  { %471 = vst.msk [vmem:[#allocation12] sm:$0xff] %vm145_vm0, %v462_v34  ;;  %3034 = vmatprep.mubr.msk.f32.mxu0 %vm145_vm0, %v462_v34  ;;  %3045 = vmatprep.mubr.msk.f32.mxu1 %vm145_vm0, %v462_v34  ;;  %v3281_v35 = vpack.c.bf16 %v3029_v33, %v462_v34  ;;  %v473_v36 = vmul.f32 %v462_v34, %v462_v34 }
 0x3ef   :  { %3046 = vmatmul.mubr.msk.f32.vlgmr.msra.gmra.mrb[4].mxu1 %vm145_vm0, %v3029_v33  ;;  %v478_v39 = vsel %vm145_vm0, %v474_v38, 0.0 }
 0x3f0   :  { %3283 = vmatprep.subr.msk.bf16.mxu0 %vm3282_vm2, %v3281_v35  ;;  %v475_v37 = vsel %vm145_vm0, %v473_v36, 0.0  ;;  %3301 = vmatpush3.bf16.msra.mxu1 %v4065_v16  ;;  %v803_v36 = vld [vmem:[#allocation6 + $0x8] sm:$0xff] }
 0x3f1   :  { %3286 = vmatpush3.bf16.xpose.msk.msra.mxu0 %vm3282_vm2, %v3281_v35  ;;  %476 = vadd.xlane.f32.xlu0 %v475_v37  ;;  %v802_v35 = vld [vmem:[#allocation6] sm:$0xff] }
 0x3f2   :  { %3059 = vmatprep.mubr.msk.f32.mxu1 %vm3769_vm8, %v3770_v18  ;;  %3308 = vmatprep.subr.bf16.mxu1 %v3768_v13  ;;  %v4079_v37 = vpack.c.bf16 %v803_v36, %v802_v35 }
 0x3f3   :  { %3060 = vmatmul.mubr.msk.f32.vlgmr.msra.gmra.mrb[6].mxu1 %vm227_vm1, %v808_v17 }
 0x3f4   :  { %3310 = vmatpush3.bf16.msra.mxu1 %v4065_v16  ;;  %3077 = vmatprep.mubr.msk.f32.mxu1 %vm3769_vm8, %v3770_v18 }
 0x3f5   :  { %479 = vadd.xlane.f32.xlu0 %v478_v39  ;;  %3311 = vmatprep.subr.bf16.mxu1 %v3768_v13  ;;  %v804_v39 = vld [vmem:[#allocation6 + $0x10] sm:$0xff] }
 0x3f8   :  { %3035 = vmatmul.mubr.msk.f32.vlgmr.msra.gmra.mrb[4].mxu0 %vm145_vm0, %v3029_v33 }
 0x47e   :  { %v477_v42 = vpop.xlane.xlu0 %476 }
 0x47f   :  { %v569_v52 = vrot.slane %v477_v42, %v568_v48 }
 0x482   :  { %v480_v46 = vpop.xlane.xlu0 %479 }
 0x483   :  { %v574_v51 = vrot.slane %v480_v46, %v573_v45 }
 0x485   :  { %v576_v53 = vsel %vm575_vm3, %v574_v51, %v569_v52 }
 0x486   :  { %v591_v55 = vadd.f32 %v576_v53, %v480_v46  ;;  %v590_v58 = vadd.f32 %v576_v53, %v477_v42  ;;  %v4086_v42 = vpack.c.bf16 %v805_v40, %v804_v39  ;;  %v4112_v53 = vld [vmem:[#allocation8] sm:$0x1] }
 0x4c2   :  { %v3047_v47 = vpop.f32.mrb[4].mxu1 }
 0x4c3   :  { %v708_v49 = vpop.f32.mrb[5].mxu1 }
 0x4c4   :  { %v3295_v50 = vpack.c.bf16 %v3047_v47, %v708_v49  ;;  %v4108_v49 = vld [vmem:[#allocation9] sm:$0x1] }
 0x4c6   :  { %3296 = vmatprep.subr.bf16.mxu0 %v3295_v50  ;;  %v878_v43 = vpop.f32.mrb[6].mxu1 }
 0x4c7   :  { %3298 = vmatpush3.bf16.msra.mxu0 %v3295_v50  ;;  %v3061_v45 = vpop.f32.mrb[7].mxu1 }
 0x4c8   :  { %3302 = vmatprep.subr.bf16.mxu0 %v3768_v13 }
 0x4cb   :  { %v3036_v54 = vpop.f32.mrb[4].mxu0 }
 0x4cc   :  { %v593_v56 = vmul.f32 2.0, %v3036_v54  ;;  %v553_v57 = vpop.f32.mrb[5].mxu0  ;;  %v879_v54 = vadd.f32 %v878_v43, %v4112_v53 }
 0x4cd   :  { %v592_v59 = vmul.f32 2.0, %v553_v57 }
 0x4ce   :  { %v595_v60 = vsub.f32 %v591_v55, %v593_v56 }
 0x4cf   :  { %v594_v61 = vsub.f32 %v590_v58, %v592_v59 }
 0x4d0   :  { %v597_v62 = vmax.f32 %v595_v60, 0.0 }
 0x4d1   :  { %v596_v63 = vmax.f32 %v594_v61, 0.0 }
 0x4d2   :  { %3425 = vrsqrt.f32 %v597_v62  ;;  %vm607_vm4 = vcmp.eq.f32.partialorder %v597_v62, inf  ;;  %v610_v4 = vand.u32 2147483648, %v597_v62  ;;  %vm609_vm6 = vcmp.eq.f32.partialorder %v597_v62, 0.0 }
 0x4d3   :  { %3427 = vrsqrt.f32 %v596_v63  ;;  %vm600_vm5 = vcmp.eq.f32.partialorder %v596_v63, inf  ;;  %v603_v5 = vand.u32 2147483648, %v596_v63  ;;  %vm602_vm7 = vcmp.eq.f32.partialorder %v596_v63, 0.0 }
 0x4dc   :  { %v3426_v0 = vpop.eup %3425 }
 0x4dd   :  { %v3428_v1 = vpop.eup %3427  ;;  %v606_v2 = vmul.f32 %v3426_v0, %v597_v62  ;;  %v981_v0 = vld [vmem:[%s4498_s13 + $0x1] sm:$0x1] }
 0x4de   :  { %v599_v3 = vmul.f32 %v3428_v1, %v596_v63  ;;  %3078 = vmatmul.mubr.msk.f32.vlgmr.msra.gmra.mrb[8].mxu1 %vm227_vm1, %v981_v0 }
 0x4df   :  { %v608_v6 = vsel %vm607_vm4, %v597_v62, %v606_v2  ;;  %3313 = vmatpush3.bf16.msra.mxu1 %v4079_v37  ;;  %3088 = vmatprep.mubr.msk.f32.mxu1 %vm3769_vm8, %v3770_v18 }
 0x4e0   :  { %v601_v7 = vsel %vm600_vm5, %v596_v63, %v599_v3  ;;  %v611_v8 = vsel %vm609_vm6, %v610_v4, %v608_v6  ;;  %3314 = vmatprep.subr.bf16.mxu1 %v3768_v13 }
 0x4e1   :  { %v604_v9 = vsel %vm602_vm7, %v603_v5, %v601_v7  ;;  %v613_v10 = vsel %vm227_vm1, %v611_v8, 0.0  ;;  %v629_v29 = vsub.f32 0.0, %v611_v8 }
 0x4e2   :  { %v612_v11 = vsel %vm227_vm1, %v604_v9, 0.0  ;;  %v628_v28 = vsub.f32 0.0, %v604_v9 }
 0x4e3   :  { %v614_v12 = vadd.f32 %v613_v10, %v612_v11  ;;  %3316 = vmatpush3.bf16.msra.mxu1 %v4086_v42 }
 0x4e4   :  { %3326 = vmatprep.subr.bf16.mxu1 %v3768_v13 }
 0x4e5   :  { %615 = vadd.xlane.f32.xlu1 %v614_v12 }
 0x572   :  { %v616_v19 = vpop.xlane.xlu1 %615 }
 0x573   :  { %v617_v20 = vrot.slane %v616_v19, 4 }
 0x575   :  { %v618_v21 = vadd.f32 %v617_v20, %v616_v19 }
 0x577   :  { %v619_v22 = vrot.slane %v618_v21, 2 }
 0x579   :  { %v620_v23 = vadd.f32 %v619_v22, %v618_v21 }
 0x57b   :  { %v621_v24 = vrot.slane %v620_v23, 1 }
 0x57d   :  { %v622_v25 = vadd.f32 %v621_v24, %v620_v23 }
 0x57f   :  { %3403 = vpush %v622_v25 }
 0x5b0   :  { %s3404_s5 = spop %3403 }
 0x5b1   :  { %v624_v26 = vstv %s3404_s5  ;;  %v1051_v7 = vpop.f32.mrb[8].mxu1  ;;  %s3775_s5 = smov [#allocation16]  }
 0x5b2   :  { %v626_v27 = vmul.f32 0.00390625, %v624_v26  ;;  %v3079_v8 = vpop.f32.mrb[9].mxu1  ;;  %v1052_v14 = vadd.f32 %v1051_v7, %v4112_v53  ;;  %v1156_v26 = vld [vmem:[%s4498_s13 + $0x2] sm:$0x1] }
 0x5b4   :  { %3429 = vrcp.f32 %v626_v27 }
 0x5be   :  { %v3430_v30 = vpop.eup %3429 }
 0x5bf   :  { %v630_v31 = vmul.f32 %v3430_v30, %v628_v28  ;;  %v631_v32 = vmul.f32 %v3430_v30, %v629_v29 }
 0x5c1   :  { %v632_v33 = vmul.f32 1.442695, %v630_v31  ;;  %v634_v34 = vmul.f32 1.442695, %v631_v32 }
 0x5c3   :  { %3431 = vpow2.f32 %v632_v33 }
 0x5c4   :  { %3433 = vpow2.f32 %v634_v34 }
 0x5cd   :  { %v3432_v38 = vpop.eup %3431 }
 0x5ce   :  { %v3434_v41 = vpop.eup %3433  ;;  %636 = vst.msk [vmem:[#allocation13] sm:$0xff] %vm227_vm1, %v3432_v38  ;;  %3052 = vmatprep.mubr.msk.f32.mxu0 %vm227_vm1, %v3432_v38 }
 0x5cf   :  { %637 = vst.msk [vmem:[#allocation13 + $0x8] sm:$0xff] %vm227_vm1, %v3434_v41  ;;  %3053 = vmatmul.mubr.msk.f32.vlgmr.msra.gmra.mrb[6].mxu0 %vm227_vm1, %v3434_v41 }
 0x5d0   :  { %3304 = vmatpush3.bf16.msra.mxu0 %v4079_v37  ;;  %3070 = vmatprep.mubr.msk.f32.mxu0 %vm3769_vm8, %v3770_v18 }
 0x5d1   :  { %3305 = vmatprep.subr.bf16.mxu0 %v3768_v13 }
 0x5d4   :  { %3307 = vmatpush3.bf16.msra.mxu0 %v4086_v42 }
 0x5d5   :  { %3317 = vmatprep.subr.bf16.mxu0 %v3768_v13 }
 0x5d7   :  { %3071 = vmatmul.mubr.f32.vlgmr.msra.gmra.mrb[8].mxu0 %v3770_v18 }
 0x5d8   :  { %3319 = vmatpush3.bf16.msra.mxu0 %v4065_v16  ;;  %3095 = vmatprep.mubr.msk.f32.mxu0 %vm3769_vm8, %v3770_v18 }
 0x5d9   :  { %3320 = vmatprep.subr.bf16.mxu0 %v3768_v13 }
 0x5db   :  { %3096 = vmatmul.mubr.msk.f32.vlgmr.msra.gmra.mrb[10].mxu0 %vm227_vm1, %v1156_v26 }
 0x5dc   :  { %3322 = vmatpush3.bf16.msra.mxu0 %v4079_v37  ;;  %3106 = vmatprep.mubr.msk.f32.mxu0 %vm3769_vm8, %v3770_v18 }
 0x5dd   :  { %3323 = vmatprep.subr.bf16.mxu0 %v3768_v13 }
 0x5e0   :  { %3325 = vmatpush3.bf16.msra.mxu0 %v4086_v42 }
 0x5e1   :  { %3335 = vmatprep.subr.bf16.mxu0 %v3768_v13 }
 0x6a2   :  { %v4098_v46 = vpop.f32.mrb[6].mxu0 }
 0x6a3   :  { %799 = vst.msk [vmem:[#allocation15 + $0x8] sm:$0xff] %vm145_vm0, %v4098_v46  ;;  %v4102_v47 = vpop.f32.mrb[7].mxu0 }
 0x6a4   :  { %798 = vst.msk [vmem:[#allocation15] sm:$0xff] %vm145_vm0, %v4102_v47  ;;  %v3372_v48 = vpack.c.bf16 %v4098_v46, %v4102_v47 }
 0x6aa   :  { %v951_v50 = vpop.f32.mrb[8].mxu0 }
 0x6ab   :  { %v952_v51 = vadd.f32 %v951_v50, %v4108_v49  ;;  %v3072_v52 = vpop.f32.mrb[9].mxu0 }
 0x6ad   :  { %963 = vrot.lane.b32.xlu1 %v952_v51, %s3771_s27  ;;  %v955_v55 = vadd.f32 %v952_v51, %v879_v54 }
 0x6ae   :  { %v1226_v33 = vpop.f32.mrb[10].mxu0 }
 0x6af   :  { %v2838_v56 = vmul.f32 -1.442695, %v955_v55  ;;  %v3097_v34 = vpop.f32.mrb[11].mxu0  ;;  %v1227_v40 = vadd.f32 %v1226_v33, %v4112_v53 }
 0x6b1   :  { %3435 = vpow2.f32 %v2838_v56 }
 0x6bb   :  { %v3436_v57 = vpop.eup %3435 }
 0x6bc   :  { %v959_v58 = vadd.f32 1.0, %v3436_v57  ;;  %v1331_v57 = vld [vmem:[%s4498_s13 + $0x3] sm:$0x1] }
 0x6be   :  { %3437 = vrcp.f32 %v959_v58 }
 0x6c8   :  { %v3438_v59 = vpop.eup %3437 }
 0x6c9   :  { %v973_v2 = vsub.f32 1.0, %v3438_v59  ;;  %v979_v4 = vmul.f32 0.0, %v3438_v59 }
 0x71f   :  { %v964_v60 = vpop.permute.xlu1 %963 }
 0x720   :  { %v966_v61 = vmul.f32 %v3438_v59, %v964_v60 }
 0x722   :  { %968 = vrot.lane.b32.xlu0 %v966_v61, %s3771_s27 }
 0x794   :  { %v969_v62 = vpop.permute.xlu0 %968 }
 0x795   :  { %v971_v63 = vadd.f32 %v969_v62, %v879_v54 }
 0x797   :  { %3439 = vtanh.f32 %v971_v63 }
 0x7a1   :  { %v3440_v1 = vpop.eup %3439 }
 0x7a2   :  { %975 = vrot.lane.b32.xlu1 %v3440_v1, %s3772_s9 }
 0x814   :  { %v976_v3 = vpop.permute.xlu1 %975 }
 0x815   :  { %v978_v5 = vmul.f32 %v976_v3, %v973_v2 }
 0x817   :  { %v980_v6 = vadd.f32 %v979_v4, %v978_v5 }
 0x819   :  { %1056 = vrot.lane.b32.xlu1 %v980_v6, %s3772_s9 }
 0x88b   :  { %v1057_v9 = vpop.permute.xlu1 %1056 }
 0x88c   :  { %3089 = vmatmul.mubr.msk.f32.vlgmr.msra.gmra.mrb[10].mxu1 %vm145_vm0, %v1057_v9 }
 0x88d   :  { %3328 = vmatpush3.bf16.msra.mxu1 %v4065_v16  ;;  %3113 = vmatprep.mubr.msk.f32.mxu1 %vm3769_vm8, %v3770_v18 }
 0x88e   :  { %3329 = vmatprep.subr.bf16.mxu1 %v3768_v13 }
 0x890   :  { %3114 = vmatmul.mubr.msk.f32.vlgmr.msra.gmra.mrb[12].mxu1 %vm227_vm1, %v1331_v57 }
 0x891   :  { %3331 = vmatpush3.bf16.msra.mxu1 %v4079_v37  ;;  %3124 = vmatprep.mubr.msk.f32.mxu1 %vm3769_vm8, %v3770_v18 }
 0x892   :  { %3332 = vmatprep.subr.bf16.mxu1 %v3768_v13 }
 0x895   :  { %3334 = vmatpush3.bf16.msra.mxu1 %v4086_v42 }
 0x896   :  { %3344 = vmatprep.subr.bf16.mxu1 %v3768_v13 }
 0x95f   :  { %v1126_v10 = vpop.f32.mrb[10].mxu1 }
 0x960   :  { %v1127_v11 = vadd.f32 %v1126_v10, %v4108_v49  ;;  %v3090_v12 = vpop.f32.mrb[11].mxu1 }
 0x962   :  { %1138 = vrot.lane.b32.xlu1 %v1127_v11, %s3771_s27  ;;  %v1130_v15 = vadd.f32 %v1127_v11, %v1052_v14 }
 0x963   :  { %v1401_v0 = vpop.f32.mrb[12].mxu1 }
 0x964   :  { %v2841_v17 = vmul.f32 -1.442695, %v1130_v15  ;;  %v3115_v1 = vpop.f32.mrb[13].mxu1 }
 0x966   :  { %3441 = vpow2.f32 %v2841_v17 }
 0x970   :  { %v3442_v19 = vpop.eup %3441 }
 0x971   :  { %v1134_v20 = vadd.f32 1.0, %v3442_v19  ;;  %v1506_v19 = vld [vmem:[%s4498_s13 + $0x4] sm:$0x1] }
 0x973   :  { %3443 = vrcp.f32 %v1134_v20 }
 0x97d   :  { %v3444_v21 = vpop.eup %3443 }
 0x97e   :  { %v1148_v28 = vsub.f32 1.0, %v3444_v21  ;;  %v1154_v30 = vmul.f32 %v3444_v21, %v980_v6  ;;  %v1402_v6 = vadd.f32 %v1401_v0, %v4112_v53 }
 0x9d4   :  { %v1139_v22 = vpop.permute.xlu1 %1138 }
 0x9d5   :  { %v1141_v23 = vmul.f32 %v3444_v21, %v1139_v22 }
 0x9d7   :  { %1143 = vrot.lane.b32.xlu0 %v1141_v23, %s3771_s27 }
 0xa49   :  { %v1144_v24 = vpop.permute.xlu0 %1143 }
 0xa4a   :  { %v1146_v25 = vadd.f32 %v1144_v24, %v1052_v14 }
 0xa4c   :  { %3445 = vtanh.f32 %v1146_v25 }
 0xa56   :  { %v3446_v27 = vpop.eup %3445 }
 0xa57   :  { %1150 = vrot.lane.b32.xlu1 %v3446_v27, %s3772_s9 }
 0xac9   :  { %v1151_v29 = vpop.permute.xlu1 %1150 }
 0xaca   :  { %v1153_v31 = vmul.f32 %v1151_v29, %v1148_v28 }
 0xacc   :  { %v1155_v32 = vadd.f32 %v1154_v30, %v1153_v31 }
 0xace   :  { %1231 = vrot.lane.b32.xlu0 %v1155_v32, %s3772_s9 }
 0xb40   :  { %v1232_v35 = vpop.permute.xlu0 %1231 }
 0xb41   :  { %3107 = vmatmul.mubr.msk.f32.vlgmr.msra.gmra.mrb[12].mxu0 %vm145_vm0, %v1232_v35 }
 0xb42   :  { %3337 = vmatpush3.bf16.msra.mxu0 %v4065_v16  ;;  %3131 = vmatprep.mubr.msk.f32.mxu0 %vm3769_vm8, %v3770_v18 }
 0xb43   :  { %3338 = vmatprep.subr.bf16.mxu0 %v3768_v13 }
 0xb45   :  { %3132 = vmatmul.mubr.msk.f32.vlgmr.msra.gmra.mrb[14].mxu0 %vm227_vm1, %v1506_v19 }
 0xb46   :  { %3340 = vmatpush3.bf16.msra.mxu0 %v4079_v37  ;;  %3142 = vmatprep.mubr.msk.f32.mxu0 %vm3769_vm8, %v3770_v18 }
 0xb47   :  { %3341 = vmatprep.subr.bf16.mxu0 %v3768_v13 }
 0xb4a   :  { %3343 = vmatpush3.bf16.msra.mxu0 %v4086_v42 }
 0xb4b   :  { %3353 = vmatprep.subr.bf16.mxu0 %v3768_v13 }
 0xc14   :  { %v1301_v36 = vpop.f32.mrb[12].mxu0 }
 0xc15   :  { %v1302_v38 = vadd.f32 %v1301_v36, %v4108_v49  ;;  %v3108_v39 = vpop.f32.mrb[13].mxu0 }
 0xc17   :  { %1313 = vrot.lane.b32.xlu1 %v1302_v38, %s3771_s27  ;;  %v1305_v41 = vadd.f32 %v1302_v38, %v1227_v40 }
 0xc18   :  { %v1576_v26 = vpop.f32.mrb[14].mxu0 }
 0xc19   :  { %v2844_v43 = vmul.f32 -1.442695, %v1305_v41  ;;  %v3133_v27 = vpop.f32.mrb[15].mxu0 }
 0xc1b   :  { %3447 = vpow2.f32 %v2844_v43 }
 0xc25   :  { %v3448_v45 = vpop.eup %3447 }
 0xc26   :  { %v1309_v50 = vadd.f32 1.0, %v3448_v45  ;;  %v1681_v45 = vld [vmem:[%s4498_s13 + $0x5] sm:$0x1] }
 0xc28   :  { %3449 = vrcp.f32 %v1309_v50 }
 0xc32   :  { %v3450_v51 = vpop.eup %3449 }
 0xc33   :  { %v1323_v59 = vsub.f32 1.0, %v3450_v51  ;;  %v1329_v61 = vmul.f32 %v3450_v51, %v1155_v32  ;;  %v1577_v32 = vadd.f32 %v1576_v26, %v4112_v53 }
 0xc89   :  { %v1314_v52 = vpop.permute.xlu1 %1313 }
 0xc8a   :  { %v1316_v54 = vmul.f32 %v3450_v51, %v1314_v52 }
 0xc8c   :  { %1318 = vrot.lane.b32.xlu0 %v1316_v54, %s3771_s27 }
 0xcfe   :  { %v1319_v55 = vpop.permute.xlu0 %1318 }
 0xcff   :  { %v1321_v56 = vadd.f32 %v1319_v55, %v1227_v40 }
 0xd01   :  { %3451 = vtanh.f32 %v1321_v56 }
 0xd0b   :  { %v3452_v58 = vpop.eup %3451 }
 0xd0c   :  { %1325 = vrot.lane.b32.xlu1 %v3452_v58, %s3772_s9 }
 0xd7e   :  { %v1326_v60 = vpop.permute.xlu1 %1325 }
 0xd7f   :  { %v1328_v62 = vmul.f32 %v1326_v60, %v1323_v59 }
 0xd81   :  { %v1330_v63 = vadd.f32 %v1329_v61, %v1328_v62 }
 0xd83   :  { %1406 = vrot.lane.b32.xlu0 %v1330_v63, %s3772_s9 }
 0xdf5   :  { %v1407_v2 = vpop.permute.xlu0 %1406 }
 0xdf6   :  { %3125 = vmatmul.mubr.msk.f32.vlgmr.msra.gmra.mrb[14].mxu1 %vm145_vm0, %v1407_v2 }
 0xdf7   :  { %3346 = vmatpush3.bf16.msra.mxu1 %v4065_v16  ;;  %3149 = vmatprep.mubr.msk.f32.mxu1 %vm3769_vm8, %v3770_v18 }
 0xdf8   :  { %3347 = vmatprep.subr.bf16.mxu1 %v3768_v13 }
 0xdfa   :  { %3150 = vmatmul.mubr.msk.f32.vlgmr.msra.gmra.mrb[16].mxu1 %vm227_vm1, %v1681_v45 }
 0xdfb   :  { %3349 = vmatpush3.bf16.msra.mxu1 %v4079_v37  ;;  %3160 = vmatprep.mubr.msk.f32.mxu1 %vm3769_vm8, %v3770_v18 }
 0xdfc   :  { %3350 = vmatprep.subr.bf16.mxu1 %v3768_v13 }
 0xdff   :  { %3352 = vmatpush3.bf16.msra.mxu1 %v4086_v42 }
 0xe00   :  { %3362 = vmatprep.subr.bf16.mxu1 %v3768_v13 }
 0xec9   :  { %v1476_v3 = vpop.f32.mrb[14].mxu1 }
 0xeca   :  { %v1477_v4 = vadd.f32 %v1476_v3, %v4108_v49  ;;  %v3126_v5 = vpop.f32.mrb[15].mxu1 }
 0xecc   :  { %1488 = vrot.lane.b32.xlu1 %v1477_v4, %s3771_s27  ;;  %v1480_v7 = vadd.f32 %v1477_v4, %v1402_v6 }
 0xecd   :  { %v1751_v57 = vpop.f32.mrb[16].mxu1 }
 0xece   :  { %v2847_v8 = vmul.f32 -1.442695, %v1480_v7  ;;  %v3151_v58 = vpop.f32.mrb[17].mxu1 }
 0xed0   :  { %3453 = vpow2.f32 %v2847_v8  ;;  %v1856_v8 = vld [vmem:[%s4498_s13 + $0x6] sm:$0x1] }
 0xeda   :  { %v3454_v9 = vpop.eup %3453 }
 0xedb   :  { %v1484_v10 = vadd.f32 1.0, %v3454_v9 }
 0xedd   :  { %3455 = vrcp.f32 %v1484_v10 }
 0xee7   :  { %v3456_v11 = vpop.eup %3455 }
 0xee8   :  { %v1498_v21 = vsub.f32 1.0, %v3456_v11  ;;  %v1504_v23 = vmul.f32 %v3456_v11, %v1330_v63  ;;  %v1752_v63 = vadd.f32 %v1751_v57, %v4112_v53 }
 0xf3e   :  { %v1489_v12 = vpop.permute.xlu1 %1488 }
 0xf3f   :  { %v1491_v14 = vmul.f32 %v3456_v11, %v1489_v12 }
 0xf41   :  { %1493 = vrot.lane.b32.xlu0 %v1491_v14, %s3771_s27 }
 0xfb3   :  { %v1494_v15 = vpop.permute.xlu0 %1493 }
 0xfb4   :  { %v1496_v17 = vadd.f32 %v1494_v15, %v1402_v6 }
 0xfb6   :  { %3457 = vtanh.f32 %v1496_v17 }
 0xfc0   :  { %v3458_v20 = vpop.eup %3457 }
 0xfc1   :  { %1500 = vrot.lane.b32.xlu1 %v3458_v20, %s3772_s9 }
0x1033   :  { %v1501_v22 = vpop.permute.xlu1 %1500 }
0x1034   :  { %v1503_v24 = vmul.f32 %v1501_v22, %v1498_v21 }
0x1036   :  { %v1505_v25 = vadd.f32 %v1504_v23, %v1503_v24 }
0x1038   :  { %1581 = vrot.lane.b32.xlu0 %v1505_v25, %s3772_s9 }
0x10aa   :  { %v1582_v28 = vpop.permute.xlu0 %1581 }
0x10ab   :  { %3143 = vmatmul.mubr.msk.f32.vlgmr.msra.gmra.mrb[16].mxu0 %vm145_vm0, %v1582_v28 }
0x10ac   :  { %3355 = vmatpush3.bf16.msra.mxu0 %v4065_v16  ;;  %3167 = vmatprep.mubr.msk.f32.mxu0 %vm3769_vm8, %v3770_v18 }
0x10ad   :  { %3356 = vmatprep.subr.bf16.mxu0 %v3768_v13 }
0x10af   :  { %3168 = vmatmul.mubr.msk.f32.vlgmr.msra.gmra.mrb[18].mxu0 %vm227_vm1, %v1856_v8  ;;  %v2439_v8 = vld [vmem:[#allocation11 + $0x8] sm:$0xff] }
0x10b0   :  { %3358 = vmatpush3.bf16.msra.mxu0 %v4079_v37  ;;  %3178 = vmatprep.mubr.msk.f32.mxu0 %vm3769_vm8, %v3770_v18 }
0x10b1   :  { %3359 = vmatprep.subr.bf16.mxu0 %v3768_v13 }
0x10b4   :  { %3361 = vmatpush3.bf16.msra.mxu0 %v4086_v42 }
0x10b5   :  { %3371 = vmatprep.subr.bf16.mxu0 %v3768_v13 }
0x117e   :  { %v1651_v29 = vpop.f32.mrb[16].mxu0 }
0x117f   :  { %v1652_v30 = vadd.f32 %v1651_v29, %v4108_v49  ;;  %v3144_v31 = vpop.f32.mrb[17].mxu0 }
0x1181   :  { %1663 = vrot.lane.b32.xlu1 %v1652_v30, %s3771_s27  ;;  %v1655_v33 = vadd.f32 %v1652_v30, %v1577_v32 }
0x1182   :  { %v1926_v17 = vpop.f32.mrb[18].mxu0 }
0x1183   :  { %v2850_v34 = vmul.f32 -1.442695, %v1655_v33  ;;  %v3169_v19 = vpop.f32.mrb[19].mxu0  ;;  %v1927_v24 = vadd.f32 %v1926_v17, %v4112_v53  ;;  %v2031_v33 = vld [vmem:[%s4498_s13 + $0x7] sm:$0x1] }
0x1185   :  { %3459 = vpow2.f32 %v2850_v34 }
0x118f   :  { %v3460_v35 = vpop.eup %3459 }
0x1190   :  { %v1659_v36 = vadd.f32 1.0, %v3460_v35 }
0x1192   :  { %3461 = vrcp.f32 %v1659_v36 }
0x119c   :  { %v3462_v38 = vpop.eup %3461 }
0x119d   :  { %v1673_v51 = vsub.f32 1.0, %v3462_v38  ;;  %v1679_v54 = vmul.f32 %v3462_v38, %v1505_v25 }
0x11f3   :  { %v1664_v39 = vpop.permute.xlu1 %1663 }
0x11f4   :  { %v1666_v40 = vmul.f32 %v3462_v38, %v1664_v39 }
0x11f6   :  { %1668 = vrot.lane.b32.xlu0 %v1666_v40, %s3771_s27 }
0x1268   :  { %v1669_v41 = vpop.permute.xlu0 %1668 }
0x1269   :  { %v1671_v43 = vadd.f32 %v1669_v41, %v1577_v32 }
0x126b   :  { %3463 = vtanh.f32 %v1671_v43 }
0x1275   :  { %v3464_v50 = vpop.eup %3463 }
0x1276   :  { %1675 = vrot.lane.b32.xlu1 %v3464_v50, %s3772_s9 }
0x12e8   :  { %v1676_v52 = vpop.permute.xlu1 %1675 }
0x12e9   :  { %v1678_v55 = vmul.f32 %v1676_v52, %v1673_v51 }
0x12eb   :  { %v1680_v56 = vadd.f32 %v1679_v54, %v1678_v55 }
0x12ed   :  { %1756 = vrot.lane.b32.xlu0 %v1680_v56, %s3772_s9 }
0x135f   :  { %v1757_v59 = vpop.permute.xlu0 %1756 }
0x1360   :  { %3161 = vmatmul.mubr.msk.f32.vlgmr.msra.gmra.mrb[18].mxu1 %vm145_vm0, %v1757_v59 }
0x1361   :  { %3364 = vmatpush3.bf16.msra.mxu1 %v4065_v16  ;;  %3185 = vmatprep.mubr.msk.f32.mxu1 %vm3769_vm8, %v3770_v18 }
0x1362   :  { %3365 = vmatprep.subr.bf16.mxu1 %v3768_v13 }
0x1364   :  { %3186 = vmatmul.mubr.msk.f32.vlgmr.msra.gmra.mrb[20].mxu1 %vm227_vm1, %v2031_v33 }
0x1365   :  { %3367 = vmatpush3.bf16.msra.mxu1 %v4079_v37  ;;  %3196 = vmatprep.mubr.msk.f32.mxu1 %vm3769_vm8, %v3770_v18 }
0x1366   :  { %3368 = vmatprep.subr.bf16.mxu1 %v3768_v13 }
0x1369   :  { %3370 = vmatpush3.bf16.msra.mxu1 %v4086_v42 }
0x136a   :  { %3380 = vmatprep.subr.bf16.mxu1 %v3768_v13 }
0x1433   :  { %v1826_v60 = vpop.f32.mrb[18].mxu1 }
0x1434   :  { %v1827_v61 = vadd.f32 %v1826_v60, %v4108_v49  ;;  %v3162_v62 = vpop.f32.mrb[19].mxu1  ;;  %v3773_v60 = vmov 0.0625  }
0x1435   :  { %v2286_v62 = vld [vmem:[%s4453_s11 + $0x8] sm:$0xff] }
0x1436   :  { %1838 = vrot.lane.b32.xlu1 %v1827_v61, %s3771_s27  ;;  %v1830_v0 = vadd.f32 %v1827_v61, %v1752_v63 }
0x1437   :  { %v2101_v37 = vpop.f32.mrb[20].mxu1 }
0x1438   :  { %v2853_v1 = vmul.f32 -1.442695, %v1830_v0  ;;  %v3187_v41 = vpop.f32.mrb[21].mxu1  ;;  %v2102_v51 = vadd.f32 %v2101_v37, %v4112_v53  ;;  %v2285_v53 = vld [vmem:[%s4453_s11] sm:$0xff] }
0x1439   :  { %v3375_v0 = vpack.c.bf16 %v2286_v62, %v2285_v53 }
0x143a   :  { %3465 = vpow2.f32 %v2853_v1  ;;  %v2362_v1 = vld [vmem:[%s4454_s12 + $0x8] sm:$0xff] }
0x1444   :  { %v3466_v2 = vpop.eup %3465 }
0x1445   :  { %v1834_v3 = vadd.f32 1.0, %v3466_v2  ;;  %v2287_v2 = vld [vmem:[%s4453_s11 + $0x10] sm:$0xff] }
0x1447   :  { %3467 = vrcp.f32 %v1834_v3  ;;  %v2288_v3 = vld [vmem:[%s4453_s11 + $0x18] sm:$0xff] }
0x1451   :  { %v3468_v16 = vpop.eup %3467 }
0x1452   :  { %v1848_v10 = vsub.f32 1.0, %v3468_v16  ;;  %v1854_v12 = vmul.f32 %v3468_v16, %v1680_v56 }
0x14a8   :  { %v1839_v4 = vpop.permute.xlu1 %1838 }
0x14a9   :  { %v1841_v5 = vmul.f32 %v3468_v16, %v1839_v4  ;;  %v2363_v4 = vld [vmem:[%s4454_s12 + $0x10] sm:$0xff] }
0x14ab   :  { %1843 = vrot.lane.b32.xlu0 %v1841_v5, %s3771_s27  ;;  %v2364_v5 = vld [vmem:[%s4454_s12 + $0x18] sm:$0xff] }
0x151d   :  { %v1844_v6 = vpop.permute.xlu0 %1843 }
0x151e   :  { %v1846_v7 = vadd.f32 %v1844_v6, %v1752_v63  ;;  %v2361_v63 = vld [vmem:[%s4454_s12] sm:$0xff]  ;;  %v2438_v6 = vld [vmem:[#allocation11] sm:$0xff] }
0x151f   :  { %v3381_v16 = vpack.c.bf16 %v2362_v1, %v2361_v63 }
0x1520   :  { %3469 = vtanh.f32 %v1846_v7  ;;  %v3378_v7 = vpack.c.bf16 %v2288_v3, %v2287_v2 }
0x152a   :  { %v3470_v9 = vpop.eup %3469 }
0x152b   :  { %1850 = vrot.lane.b32.xlu1 %v3470_v9, %s3772_s9  ;;  %v3384_v9 = vpack.c.bf16 %v2364_v5, %v2363_v4 }
0x159d   :  { %v1851_v11 = vpop.permute.xlu1 %1850 }
0x159e   :  { %v1853_v14 = vmul.f32 %v1851_v11, %v1848_v10  ;;  %v3386_v10 = vpack.c.bf16 %v2439_v8, %v2438_v6 }
0x15a0   :  { %v1855_v15 = vadd.f32 %v1854_v12, %v1853_v14 }
0x15a2   :  { %1931 = vrot.lane.b32.xlu0 %v1855_v15, %s3772_s9 }
0x1614   :  { %v1932_v20 = vpop.permute.xlu0 %1931 }
0x1615   :  { %3179 = vmatmul.mubr.msk.f32.vlgmr.msra.gmra.mrb[20].mxu0 %vm145_vm0, %v1932_v20 }
0x1616   :  { %3373 = vmatpush3.bf16.msra.mxu0 %v3372_v48  ;;  %3203 = vmatprep.mubr.msk.f32.mxu0 %vm3769_vm8, %v3770_v18 }
0x1617   :  { %3374 = vmatprep.subr.bf16.mxu0 %v3768_v13 }
0x1619   :  { %3204 = vmatmul.mubr.msk.f32.vlgmr.msra.gmra.mrb[22].mxu0 %vm227_vm1, %v3773_v60 }
0x161a   :  { %3214 = vmatprep.mubr.msk.f32.mxu0 %vm3769_vm8, %v3770_v18  ;;  %3376 = vmatpush3.bf16.msra.mxu0 %v3375_v0 }
0x161b   :  { %3377 = vmatprep.subr.bf16.mxu0 %v3768_v13 }
0x161e   :  { %3379 = vmatpush3.bf16.msra.mxu0 %v3378_v7 }
0x161f   :  { %3387 = vmatprep.subr.bf16.mxu0 %v3386_v10 }
0x16e8   :  { %v2001_v21 = vpop.f32.mrb[20].mxu0 }
0x16e9   :  { %v2002_v22 = vadd.f32 %v2001_v21, %v4108_v49  ;;  %v3180_v23 = vpop.f32.mrb[21].mxu0 }
0x16ea   :  { %v2441_v23 = vld [vmem:[#allocation11 + $0x18] sm:$0xff] }
0x16eb   :  { %2013 = vrot.lane.b32.xlu1 %v2002_v22, %s3771_s27  ;;  %v2005_v25 = vadd.f32 %v2002_v22, %v1927_v24  ;;  %v2440_v22 = vld [vmem:[#allocation11 + $0x10] sm:$0xff] }
0x16ec   :  { %v2281_v12 = vpop.f32.mrb[22].mxu0 }
0x16ed   :  { %v2856_v26 = vmul.f32 -1.442695, %v2005_v25  ;;  %v3205_v14 = vpop.f32.mrb[23].mxu0 }
0x16ef   :  { %3471 = vpow2.f32 %v2856_v26 }
0x16f9   :  { %v3472_v27 = vpop.eup %3471 }
0x16fa   :  { %v2009_v28 = vadd.f32 1.0, %v3472_v27 }
0x16fc   :  { %3473 = vrcp.f32 %v2009_v28  ;;  %v2448_v28 = vsub.s32 0, %v4057_v44  ;;  %v2865_v44 = vld [vmem:[%s4457_s15] ss:$0 sm:$0xff] }
0x1706   :  { %v3474_v48 = vpop.eup %3473 }
0x1707   :  { %v2023_v35 = vsub.f32 1.0, %v3474_v48  ;;  %v2029_v38 = vmul.f32 %v3474_v48, %v1855_v15 }
0x175d   :  { %v2014_v29 = vpop.permute.xlu1 %2013 }
0x175e   :  { %v2016_v30 = vmul.f32 %v3474_v48, %v2014_v29  ;;  %v2443_v29 = vld [vmem:[%s4456_s14] sm:$0x1] }
0x1760   :  { %2018 = vrot.lane.b32.xlu0 %v2016_v30, %s3771_s27 }
0x17d2   :  { %v2019_v31 = vpop.permute.xlu0 %2018 }
0x17d3   :  { %v2021_v32 = vadd.f32 %v2019_v31, %v1927_v24  ;;  %v3390_v24 = vpack.c.bf16 %v2441_v23, %v2440_v22 }
0x17d5   :  { %3475 = vtanh.f32 %v2021_v32 }
0x17df   :  { %v3476_v34 = vpop.eup %3475 }
0x17e0   :  { %2025 = vrot.lane.b32.xlu1 %v3476_v34, %s3772_s9 }
0x1852   :  { %v2026_v36 = vpop.permute.xlu1 %2025 }
0x1853   :  { %v2028_v39 = vmul.f32 %v2026_v36, %v2023_v35 }
0x1855   :  { %v2030_v40 = vadd.f32 %v2029_v38, %v2028_v39 }
0x1857   :  { %2106 = vrot.lane.b32.xlu0 %v2030_v40, %s3772_s9 }
0x18c9   :  { %v2107_v43 = vpop.permute.xlu0 %2106 }
0x18ca   :  { %3197 = vmatmul.mubr.msk.f32.vlgmr.msra.gmra.mrb[22].mxu1 %vm145_vm0, %v2107_v43  ;;  %v2625_v43 = vld [vmem:[%s4458_s16] sm:$0xff] }
0x18cb   :  { %3225 = vmatprep.mubr.msk.f32.mxu1 %vm3769_vm8, %v3770_v18  ;;  %3382 = vmatpush3.bf16.msra.mxu1 %v3381_v16 }
0x18cc   :  { %3383 = vmatprep.subr.bf16.mxu1 %v3768_v13 }
0x18cf   :  { %3385 = vmatpush3.bf16.msra.mxu1 %v3384_v9 }
0x18d0   :  { %3394 = vmatprep.subr.bf16.mxu1 %v3768_v13 }
0x18d2   :  { %3226 = vmatmul.mubr.msk.f32.vlgmr.msra.gmra.mrb[24].mxu1 %vm145_vm0, %v2281_v12 }
0x18d3   :  { %3243 = vmatprep.mubr.msk.f32.mxu1 %vm3769_vm8, %v3770_v18 }
0x199d   :  { %v2176_v42 = vpop.f32.mrb[22].mxu1 }
0x199e   :  { %v2177_v45 = vadd.f32 %v2176_v42, %v4108_v49  ;;  %v3198_v50 = vpop.f32.mrb[23].mxu1  ;;  %v2626_v42 = vld [vmem:[%s4458_s16 + $0x8] sm:$0xff] }
0x19a0   :  { %2188 = vrot.lane.b32.xlu1 %v2177_v45, %s3771_s27  ;;  %v2180_v52 = vadd.f32 %v2177_v45, %v2102_v51 }
0x19a2   :  { %v2859_v54 = vmul.f32 -1.442695, %v2180_v52  ;;  %v2627_v52 = vld [vmem:[%s4458_s16 + $0x10] sm:$0xff] }
0x19a4   :  { %3477 = vpow2.f32 %v2859_v54  ;;  %v2628_v54 = vld [vmem:[%s4458_s16 + $0x18] sm:$0xff]  ;;  %s2753_s16 = sshll.u32 %s3775_s5, 4  ;;  %s2754_s16 = int_to_ptr.vmem [resolvable:$true] %s2753_s16 }
0x19a5   :  { %v2434_v26 = vpop.f32.mrb[24].mxu1 }
0x19a6   :  { %v3227_v27 = vpop.f32.mrb[25].mxu1 }
0x19ae   :  { %v3478_v55 = vpop.eup %3477 }
0x19af   :  { %v2184_v56 = vadd.f32 1.0, %v3478_v55  ;;  %v3401_v55 = vpack.c.bf16 %v2628_v54, %v2627_v52 }
0x19b1   :  { %3479 = vrcp.f32 %v2184_v56 }
0x19bb   :  { %v3480_v57 = vpop.eup %3479 }
0x19bc   :  { %v2198_v15 = vsub.f32 1.0, %v3480_v57  ;;  %v2204_v19 = vmul.f32 %v3480_v57, %v2030_v40 }
0x1a12   :  { %v2189_v58 = vpop.permute.xlu1 %2188 }
0x1a13   :  { %v2191_v59 = vmul.f32 %v3480_v57, %v2189_v58 }
0x1a15   :  { %2193 = vrot.lane.b32.xlu0 %v2191_v59, %s3771_s27  ;;  %s4499_s27 = sld [smem:[#allocation32_spill]] }
0x1a1b   :  { %v2549_v50 = vld [vmem:[%s4499_s27] sm:$0xf] }
0x1a87   :  { %v2194_v49 = vpop.permute.xlu0 %2193 }
0x1a88   :  { %v2196_v61 = vadd.f32 %v2194_v49, %v2102_v51  ;;  %v3398_v51 = vpack.c.bf16 %v2626_v42, %v2625_v43 }
0x1a8a   :  { %3481 = vtanh.f32 %v2196_v61 }
0x1a94   :  { %v3482_v11 = vpop.eup %3481 }
0x1a95   :  { %2200 = vrot.lane.b32.xlu1 %v3482_v11, %s3772_s9 }
0x1b07   :  { %v2201_v17 = vpop.permute.xlu1 %2200 }
0x1b08   :  { %v2203_v20 = vmul.f32 %v2201_v17, %v2198_v15 }
0x1b0a   :  { %v2205_v21 = vadd.f32 %v2204_v19, %v2203_v20 }
0x1b0c   :  { %2207 = vrot.lane.b32.xlu0 %v2205_v21, %s3772_s9 }
0x1b7e   :  { %v2208_v25 = vpop.permute.xlu0 %2207 }
0x1b7f   :  { %3215 = vmatmul.mubr.msk.f32.vlgmr.msra.gmra.mrb[24].mxu0 %vm145_vm0, %v2208_v25  ;;  %2211 = vst.msk [vmem:[#allocation16] sm:$0x1] %vm2210_vm9, %v2208_v25 }
0x1b80   :  { %3389 = vmatpush3.bf16.msra.mxu0 %v3386_v10  ;;  %3236 = vmatprep.mubr.msk.f32.mxu0 %vm145_vm0, %v4102_v47 }
0x1b81   :  { %3391 = vmatprep.subr.bf16.mxu0 %v3390_v24 }
0x1b84   :  { %3393 = vmatpush3.bf16.msra.mxu0 %v3390_v24 }
0x1b87   :  { %3237 = vmatmul.mubr.msk.f32.vlgmr.msra.gmra.mrb[26].mxu0 %vm145_vm0, %v4098_v46 }
0x1c52   :  { %v2357_v48 = vpop.f32.mrb[24].mxu0 }
0x1c53   :  { %v2449_v30 = vrot.slane %v2357_v48, %v2448_v28  ;;  %v2442_v31 = vadd.f32 %v2434_v26, %v2357_v48  ;;  %v3216_v32 = vpop.f32.mrb[25].mxu0 }
0x1c55   :  { %v2444_v33 = vadd.f32 %v2443_v29, %v2442_v31  ;;  %2451 = vrot.lane.b32.xlu1 %v2449_v30, %s3772_s9 }
0x1c57   :  { %v2445_v47 = vmax.f32 %v2444_v33, 0.0 }
0x1c59   :  { %2546 = vst.msk [vmem:[#allocation18] sm:$0x1] %vm2210_vm9, %v2445_v47 }
0x1c5a   :  { %v3238_v34 = vpop.f32.mrb[26].mxu0 }
0x1c5b   :  { %v2526_v46 = vpop.f32.mrb[27].mxu0 }
0x1cc7   :  { %v2452_v35 = vpop.permute.xlu1 %2451 }
0x1cc8   :  { %v2527_v36 = vadd.f32 %v2526_v46, %v2452_v35  ;;  %v2532_v38 = vadd.f32 %v3238_v34, %v2452_v35 }
0x1cca   :  { %v2542_v39 = vadd.f32 %v2865_v44, %v2527_v36  ;;  %v2543_v40 = vadd.f32 %v2865_v44, %v2532_v38 }
0x1ccc   :  { %v2544_v37 = vmax.f32 %v2542_v39, 0.0  ;;  %v2545_v41 = vmax.f32 %v2543_v40, 0.0 }
0x1cce   :  { %v3395_v45 = vpack.c.bf16 %v2545_v41, %v2544_v37  ;;  %2547 = vst.msk [vmem:[#allocation19] sm:$0xff] %vm145_vm0, %v2544_v37  ;;  %2548 = vst.msk [vmem:[#allocation19 + $0x8] sm:$0xff] %vm145_vm0, %v2545_v41 }
0x1cd0   :  { %3396 = vmatpush3.bf16.msra.mxu1 %v3395_v45 }
0x1cd1   :  { %3397 = vmatprep.subr.bf16.mxu1 %v3768_v13 }
0x1cd3   :  { %3244 = vmatmul.mubr.msk.f32.vlgmr.msra.gmra.mrb[26].mxu1 %vm227_vm1, %v2549_v50 }
0x1cd4   :  { %3399 = vmatpush3.bf16.msra.mxu1 %v3398_v51  ;;  %3254 = vmatprep.mubr.msk.f32.mxu1 %vm3769_vm8, %v3770_v18 }
0x1cd5   :  { %3400 = vmatprep.subr.bf16.mxu1 %v3768_v13 }
0x1cd8   :  { %3402 = vmatpush3.bf16.msra.mxu1 %v3401_v55 }
0x1da6   :  { %v2619_v56 = vpop.f32.mrb[26].mxu1 }
0x1da7   :  { %2624 = vst.msk [vmem:[#allocation21] sm:$0xf] %vm2623_vm10, %v2619_v56  ;;  %v3245_v57 = vpop.f32.mrb[27].mxu1  ;;  %3255 = vmatmul.mubr.msk.f32.vlgmr.msra.gmra.mrb[28].mxu1 %vm145_vm0, %v2619_v56 }
0x1da8   :  { %3604 = shalt.err (!%p3601_p2)
}
0x1da9   :  { %s3605_s12 = scalar_lea.hbm %s4461_s19, 256 }
0x1daa   :  { %p3606_p3 = scmp.ne.s32.totalorder %s4461_s19, %s3605_s12  ;;  %p3609_p4 = scmp.lt.u32.totalorder %s3605_s12, %s4461_s19 }
0x1dac   :  { %p3611_p5 = pnand %p3609_p4, %p3606_p3 }
0x1dae   :  { %3614 = shalt.err (!%p3611_p5)
}
0x1daf   :  { %2734 = dma.vmem_to_hbm [thread:$0]  %s2729_s1, 256, %s4461_s19, [#allocation14], %s4491_s3, %s4491_s3, %s3764_s29  }
0x1db0   :  { %s3615_s15 = scalar_lea.vmem %s2754_s16, 16  ;;  %s3619_s10 = scalar_lea.vmem %s2754_s16, 32 }
0x1db1   :  { %p3616_p6 = scmp.ne.s32.totalorder %s2754_s16, %s3615_s15  ;;  %p3620_p7 = scmp.lt.s32.totalorder %s2754_s16, %s2754_s16 }
0x1db2   :  { %p3621_p8 = scmp.lt.s32.totalorder %s3619_s10, %s3615_s15 }
0x1db4   :  { %p3622_p9 = por %p3621_p8, %p3620_p7 }
0x1db6   :  { %p3623_p10 = pnand %p3622_p9, %p3616_p6 }
0x1db8   :  { %3626 = shalt.err (!%p3623_p10)
}
0x1db9   :  { %s3627_s17 = scalar_lea.hbm %s4463_s21, 16 }
0x1dba   :  { %p3628_p11 = scmp.ne.s32.totalorder %s4463_s21, %s3627_s17  ;;  %p3631_p12 = scmp.lt.u32.totalorder %s3627_s17, %s4463_s21 }
0x1dbc   :  { %p3633_p13 = pnand %p3631_p12, %p3628_p11 }
0x1dbe   :  { %3636 = shalt.err (!%p3633_p13)
}
0x1dbf   :  { %2756 = dma.vmem_to_hbm [thread:$0]  %s2754_s16, 16, %s4463_s21, [#allocation17]  }
0x1dc0   :  { %s3776_s4 = smov [#allocation19]   ;;  %s3777_s11 = smov [#allocation12]  }
0x1dc1   :  { %s2772_s13 = sshll.u32 %s3776_s4, 4  ;;  %s2716_s12 = sshll.u32 %s3777_s11, 4  ;;  %s2773_s13 = int_to_ptr.vmem [resolvable:$true] %s2772_s13  ;;  %s4363_s12 = int_to_ptr.vmem [resolvable:$true] %s2716_s12 }
0x1dc2   :  { %s3637_s28 = scalar_lea.vmem %s2773_s13, 256  ;;  %p3642_p1 = scmp.lt.s32.totalorder %s2773_s13, %s2773_s13 }
0x1dc3   :  { %p3638_p0 = scmp.ne.s32.totalorder %s2773_s13, %s3637_s28  ;;  %p3643_p2 = scmp.lt.s32.totalorder %s3637_s28, %s3637_s28 }
0x1dc5   :  { %p3644_p3 = por %p3643_p2, %p3642_p1 }
0x1dc7   :  { %p3645_p4 = pnand %p3644_p3, %p3638_p0 }
0x1dc9   :  { %3648 = shalt.err (!%p3645_p4)
}
0x1dca   :  { %s3649_s26 = scalar_lea.hbm %s4465_s23, 256 }
0x1dcb   :  { %p3650_p5 = scmp.ne.s32.totalorder %s4465_s23, %s3649_s26  ;;  %p3653_p6 = scmp.lt.u32.totalorder %s3649_s26, %s4465_s23 }
0x1dcd   :  { %p3655_p7 = pnand %p3653_p6, %p3650_p5 }
0x1dcf   :  { %3658 = shalt.err (!%p3655_p7)
}
0x1dd0   :  { %2778 = dma.vmem_to_hbm [thread:$0]  %s2773_s13, 256, %s4465_s23, [#allocation20], %s4491_s3, %s4491_s3, %s3764_s29  }
0x1dd1   :  { %s3659_s27 = scalar_lea.vmem %s4363_s12, 256  ;;  %p3664_p9 = scmp.lt.s32.totalorder %s4363_s12, %s4363_s12 }
0x1dd2   :  { %p3660_p8 = scmp.ne.s32.totalorder %s4363_s12, %s3659_s27  ;;  %p3665_p10 = scmp.lt.s32.totalorder %s3659_s27, %s3659_s27 }
0x1dd4   :  { %p3666_p11 = por %p3665_p10, %p3664_p9 }
0x1dd6   :  { %p3667_p12 = pnand %p3666_p11, %p3660_p8 }
0x1dd8   :  { %3670 = shalt.err (!%p3667_p12)
}
0x1dd9   :  { %s3671_s8 = scalar_lea.hbm %s4460_s18, 256 }
0x1dda   :  { %p3672_p13 = scmp.ne.s32.totalorder %s4460_s18, %s3671_s8  ;;  %p3675_p0 = scmp.lt.u32.totalorder %s3671_s8, %s4460_s18 }
0x1ddc   :  { %p3677_p1 = pnand %p3675_p0, %p3672_p13 }
0x1dde   :  { %3680 = shalt.err (!%p3677_p1)
}
0x1ddf   :  { %2722 = dma.vmem_to_hbm [thread:$0]  %s4363_s12, 256, %s4460_s18, [#allocation5], %s4491_s3, %s4491_s3, %s3764_s29  }
0x1de0   :  { %s3778_s4 = smov [#allocation15]   ;;  %s3779_s11 = smov [#allocation18]  }
0x1de1   :  { %s2740_s13 = sshll.u32 %s3778_s4, 4  ;;  %s2763_s28 = sshll.u32 %s3779_s11, 4  ;;  %s2741_s13 = int_to_ptr.vmem [resolvable:$true] %s2740_s13  ;;  %s2764_s28 = int_to_ptr.vmem [resolvable:$true] %s2763_s28 }
0x1de2   :  { %s3681_s30 = scalar_lea.vmem %s2741_s13, 256  ;;  %p3686_p3 = scmp.lt.s32.totalorder %s2741_s13, %s2741_s13 }
0x1de3   :  { %p3682_p2 = scmp.ne.s32.totalorder %s2741_s13, %s3681_s30  ;;  %p3687_p4 = scmp.lt.s32.totalorder %s3681_s30, %s3681_s30 }
0x1de5   :  { %p3688_p5 = por %p3687_p4, %p3686_p3 }
0x1de7   :  { %p3689_p6 = pnand %p3688_p5, %p3682_p2 }
0x1de9   :  { %3692 = shalt.err (!%p3689_p6)
}
0x1dea   :  { %s3693_s9 = scalar_lea.hbm %s4462_s20, 256 }
0x1deb   :  { %p3694_p7 = scmp.ne.s32.totalorder %s4462_s20, %s3693_s9  ;;  %p3697_p8 = scmp.lt.u32.totalorder %s3693_s9, %s4462_s20 }
0x1ded   :  { %p3699_p9 = pnand %p3697_p8, %p3694_p7 }
0x1def   :  { %3702 = shalt.err (!%p3699_p9)
}
0x1df0   :  { %2746 = dma.vmem_to_hbm [thread:$0]  %s2741_s13, 256, %s4462_s20, [#allocation14], %s4491_s3, %s4491_s3, %s3764_s29  }
0x1df1   :  { %s3703_s10 = scalar_lea.vmem %s2764_s28, 16  ;;  %s3707_s27 = scalar_lea.vmem %s2764_s28, 32 }
0x1df2   :  { %p3704_p10 = scmp.ne.s32.totalorder %s2764_s28, %s3703_s10  ;;  %p3708_p11 = scmp.lt.s32.totalorder %s2764_s28, %s2764_s28 }
0x1df3   :  { %p3709_p12 = scmp.lt.s32.totalorder %s3707_s27, %s3703_s10 }
0x1df5   :  { %p3710_p13 = por %p3709_p12, %p3708_p11 }
0x1df7   :  { %p3711_p0 = pnand %p3710_p13, %p3704_p10 }
0x1df9   :  { %3714 = shalt.err (!%p3711_p0)
}
0x1dfa   :  { %s3715_s8 = scalar_lea.hbm %s4464_s22, 16 }
0x1dfb   :  { %p3716_p1 = scmp.ne.s32.totalorder %s4464_s22, %s3715_s8  ;;  %p3719_p2 = scmp.lt.u32.totalorder %s3715_s8, %s4464_s22 }
0x1dfd   :  { %p3721_p3 = pnand %p3719_p2, %p3716_p1 }
0x1dff   :  { %3724 = shalt.err (!%p3721_p3)
}
0x1e00   :  { %2766 = dma.vmem_to_hbm [thread:$0]  %s2764_s28, 16, %s4464_s22, [#allocation17]  }
0x1e01   :  { %s3780_s3 = smov [#allocation21]  }
0x1e02   :  { %s2785_s23 = sshll.u32 %s3780_s3, 4  ;;  %s2786_s23 = int_to_ptr.vmem [resolvable:$true] %s2785_s23 }
0x1e03   :  { %s3725_s1 = scalar_lea.vmem %s2786_s23, 64  ;;  %p3730_p5 = scmp.lt.s32.totalorder %s2786_s23, %s2786_s23 }
0x1e04   :  { %p3726_p4 = scmp.ne.s32.totalorder %s2786_s23, %s3725_s1  ;;  %p3731_p6 = scmp.lt.s32.totalorder %s3725_s1, %s3725_s1 }
0x1e06   :  { %p3732_p7 = por %p3731_p6, %p3730_p5 }
0x1e08   :  { %p3733_p8 = pnand %p3732_p7, %p3726_p4 }
0x1e0a   :  { %3736 = shalt.err (!%p3733_p8)
}
0x1e0b   :  { %s3737_s11 = scalar_lea.hbm %s4466_s24, 64 }
0x1e0c   :  { %p3738_p9 = scmp.ne.s32.totalorder %s4466_s24, %s3737_s11  ;;  %p3741_p10 = scmp.lt.u32.totalorder %s3737_s11, %s4466_s24 }
0x1e0e   :  { %p3743_p11 = pnand %p3741_p10, %p3738_p9 }
0x1e10   :  { %3746 = shalt.err (!%p3743_p11)
}
0x1e11   :  { %2788 = dma.vmem_to_hbm [thread:$0]  %s2786_s23, 64, %s4466_s24, [#allocation20]   ;;  %v2867_v13 = vld [vmem:[#allocation2] ss:$0 sm:$0xff]  ;;  %vm2709_vm11 = vcmask 3072  }
0x1e7a   :  { %v2705_v18 = vpop.f32.mrb[28].mxu1 }
0x1e7b   :  { %v2706_v58 = vadd.f32 %v2867_v13, %v2705_v18  ;;  %v3256_v59 = vpop.f32.mrb[29].mxu1 }
0x1e7d   :  { %2710 = vst.msk [vmem:[%s4467_s25] sm:$0xf] %vm2709_vm11, %v2706_v58 }
0x1e7e   :  { %3753 = dma.done.wait [#allocation5], 256  }
0x1e7f   :  { %3754 = vsyncadd [#allocation5], 4294967040 }
0x1e80   :  { %3755 = dma.done.wait [#allocation14], 512  }
0x1e81   :  { %3756 = vsyncadd [#allocation14], 4294966784 }
0x1e82   :  { %3757 = dma.done.wait [#allocation17], 32  }
0x1e83   :  { %3758 = vsyncadd [#allocation17], 4294967264 }
0x1e84   :  { %3759 = dma.done.wait [#allocation20], 320  }
0x1e85   :  { %3760 = vsyncadd [#allocation20], 4294966976 }
0x1e86   :  { %2814 = vsyncpa [#allocation4], 1 }
0x1e87   :  { %2815 = vsyncpa [#allocation7], 1 }
0x1e88   :  { %2816 = vsyncpa [#allocation10], 1 }
0x1e89   :  { %2817 = vsyncpa [#allocation5], 1 }
0x1e8a   :  { %2818 = vsyncpa [#allocation14], 1 }
0x1e8b   :  { %2819 = vsyncpa [#allocation17], 1 }
0x1e8c   :  { %2820 = vsyncpa [#allocation20], 1 }

</bundles_post_ra>
